<compile_context>
chip_gen: v5e
topology: v5e:2x2
jax: 0.10.0
libtpu: 0.0.40
codegen_flags: <defaults>
</compile_context>

<pallas_src>
import jax
import jax.numpy as jnp
from jax import lax
from jax.experimental import pallas as pl
from jax.experimental.pallas import tpu as pltpu

BETA = 0.95
THRESHOLD = 1.0
NUM_STEPS = 15
NUM_CLASSES = 5

# (source-group, pooled-grid delta) for a source row/col offset y = idx - 1
# relative to the top-left corner of a 2x2 pool window:  y = 2*delta + group.
SRC_OFFSETS = ((1, -1), (0, 0), (1, 0), (0, 1))


# ------------------------------------------------------------------ LIF ----

def _leaky_mem(cur, mem_prev):
    """snntorch Leaky, reset_mechanism='subtract' (delayed reset): new membrane."""
    return BETA * mem_prev + cur - jnp.where(mem_prev > THRESHOLD, THRESHOLD, 0.0)


# ------------------------------------------------ kernel A: conv1 + pool ----

def _conv1_pool_kernel(p_ref, w_ref, b_ref, out_ref):
    # p_ref: (4, 9*Cin, tile) pooled-fused patches (pool group leading),
    # w_ref: (C1, 9*Cin), b_ref: (C1, 1), out_ref: (C1, tile).
    z = None
    for g in range(4):
        zg = jnp.dot(w_ref[...], p_ref[g], preferred_element_type=jnp.float32)
        z = zg if z is None else jnp.maximum(z, zg)
    out_ref[...] = z + b_ref[...]          # bias after max (exact)


def conv1_pool(p1g, w1T, b1col, m1, tile):
    c1 = w1T.shape[0]
    c9 = p1g.shape[1]
    return pl.pallas_call(
        _conv1_pool_kernel,
        out_shape=jax.ShapeDtypeStruct((c1, m1), jnp.float32),
        grid=(m1 // tile,),
        in_specs=[
            pl.BlockSpec((4, c9, tile), lambda j: (0, 0, j)),
            pl.BlockSpec((c1, c9), lambda j: (0, 0)),
            pl.BlockSpec((c1, 1), lambda j: (0, 0)),
        ],
        out_specs=pl.BlockSpec((c1, tile), lambda j: (0, j)),
        compiler_params=pltpu.CompilerParams(dimension_semantics=("parallel",)),
    )(p1g, w1T, b1col)


# ------------------------------- kernel B: layers 1-2 fused over all steps --

def _make_step_kernel(w4, c1, c2):
    def step_kernel(cur1_ref, w2_ref, b2_ref, mask_ref, spk2_ref,
                    mem1_ref, mem2_ref):
        t = pl.program_id(1)
        tile = cur1_ref.shape[1]

        @pl.when(t == 0)
        def _():
            mem1_ref[...] = jnp.zeros_like(mem1_ref)
            mem2_ref[...] = jnp.zeros_like(mem2_ref)

        # ---- layer 1 LIF on the (pool-group, channel)-major layout --------
        mem1 = mem1_ref[...]
        mem1_new = _leaky_mem(cur1_ref[...], mem1)
        mem1_ref[...] = mem1_new
        spk1 = (mem1_new > THRESHOLD).astype(jnp.float32)      # (4*c1, tile)

        # ---- in-kernel im2col onto the pooled (h4, w4) grid: 16 taps,
        #      each = aligned sublane slice + small lane roll + resident mask.
        slabs = []
        for iy, (gh_src, ah) in enumerate(SRC_OFFSETS):
            for ix, (gw_src, aw) in enumerate(SRC_OFFSETS):
                gsrc = 2 * gh_src + gw_src
                src = spk1[gsrc * c1:(gsrc + 1) * c1, :]
                off = ah * w4 + aw
                shifted = pltpu.roll(src, (-off) % tile, axis=1) if off else src
                if ah == 0 and aw == 0:
                    slabs.append(shifted)                       # mask all-ones
                else:
                    row = iy * 4 + ix
                    slabs.append(shifted * mask_ref[pl.ds(row, 1), :])
        taps = jnp.concatenate(slabs, axis=0).astype(jnp.bfloat16)  # (16*c1, tile)

        # ---- conv2 as one bf16 matmul; 2x2 max-pool = max over the 4
        #      output-group row blocks (bias after max, exact) ---------------
        cur2g = jnp.dot(w2_ref[...], taps, preferred_element_type=jnp.float32)
        pooled = jnp.maximum(
            jnp.maximum(cur2g[0 * c2:1 * c2, :], cur2g[1 * c2:2 * c2, :]),
            jnp.maximum(cur2g[2 * c2:3 * c2, :], cur2g[3 * c2:4 * c2, :]),
        ) + b2_ref[...]

        # ---- layer 2 LIF on the compacted (c2, tile) grid ------------------
        mem2 = mem2_ref[...]
        mem2_new = _leaky_mem(pooled, mem2)
        mem2_ref[...] = mem2_new
        spk2_ref[0] = (mem2_new > THRESHOLD).astype(jnp.bfloat16)

    return step_kernel


# --------------------------------- kernel C: fc1 + LIF3 fused over steps ----

def _fc_step_kernel(x_ref, w_ref, b_ref, spk_ref, memo_ref, mem_ref):
    t = pl.program_id(0)

    @pl.when(t == 0)
    def _():
        mem_ref[...] = jnp.zeros_like(mem_ref)

    # lane-dense (K, feat) weight, contract over feat (NT matmul)
    cur = lax.dot_general(x_ref[0], w_ref[...],
                          dimension_numbers=(((1,), (1,)), ((), ())),
                          preferred_element_type=jnp.float32) + b_ref[...]
    mem = mem_ref[...]
    mem_new = _leaky_mem(cur, mem)
    mem_ref[...] = mem_new
    spk_ref[0] = (mem_new > THRESHOLD).astype(jnp.float32)
    memo_ref[0] = mem_new


# --------------------------------------------------------------- JAX glue ---

def pooled_conv1_patches(x_nhwc):
    """3x3 / pad-1 im2col patches, pool group leading.

    (N, H, W, C) -> (4, 9*C, M1) with columns ordered (n, h2, w2), leading dim
    the 2x2 pool-window position, rows ordered (kh, kw, c)."""
    n, h, w, c = x_nhwc.shape
    fp = jnp.pad(x_nhwc, ((0, 0), (1, 1), (1, 1), (0, 0)))
    taps = [fp[:, kh:kh + h, kw:kw + w, :] for kh in range(3) for kw in range(3)]
    pat = jnp.concatenate(taps, axis=-1)                    # (N, H, W, 9C)
    pat = pat.reshape(n, h // 2, 2, w // 2, 2, 9 * c)
    pat = pat.transpose(2, 4, 0, 1, 3, 5)                   # (2, 2, N, H2, W2, 9C)
    pat = pat.reshape(4, n * (h // 2) * (w // 2), 9 * c)
    return pat.transpose(0, 2, 1)                           # (4, 9C, M1)


def conv_weight_to_matrix_T(w_oihw):
    """PyTorch (Cout, Cin, 3, 3) -> (Cout, 9*Cin), columns ordered (kh, kw, cin)."""
    cout = w_oihw.shape[0]
    return jnp.transpose(w_oihw, (0, 2, 3, 1)).reshape(cout, -1)


def conv2_pool_weight(w2_oihw):
    """conv2 weights rearranged for the fused conv2+pool matmul.

    Output (4*C2, 16*C1): row = (output pool-group g, out channel c),
    col = (source offset tap s=(iy, ix), in channel ci); entry is
    W2[c, ci, iy-gh, ix-gw] when that (kh, kw) is inside the 3x3 kernel."""
    c2, c1 = w2_oihw.shape[0], w2_oihw.shape[1]
    wbig = jnp.zeros((4, c2, 16, c1), jnp.float32)
    for gh in range(2):
        for gw in range(2):
            g = 2 * gh + gw
            for iy in range(4):
                kh = iy - gh
                if kh < 0 or kh > 2:
                    continue
                for ix in range(4):
                    kw = ix - gw
                    if kw < 0 or kw > 2:
                        continue
                    wbig = wbig.at[g, :, iy * 4 + ix, :].set(w2_oihw[:, :, kh, kw])
    return wbig.reshape(4 * c2, 16 * c1)


def build_tap_masks(n, h4, w4):
    """(16, n*h4*w4) f32 validity masks for the 16 im2col source offsets."""
    h_idx = jnp.arange(h4)
    w_idx = jnp.arange(w4)
    rows = []
    for (_, ah) in SRC_OFFSETS:
        vh = ((h_idx + ah) >= 0) & ((h_idx + ah) < h4)
        for (_, aw) in SRC_OFFSETS:
            vw = ((w_idx + aw) >= 0) & ((w_idx + aw) < w4)
            m = (vh[:, None] & vw[None, :]).astype(jnp.float32).reshape(-1)
            rows.append(jnp.tile(m, n))
    return jnp.stack(rows, axis=0)


def fc_weight_lane_dense(w_torch, c2, h4, w4):
    """PyTorch Linear weight (K, C2*H4*W4), torch (c,h,w) flatten ->
    lane-dense (K, H4*W4*C2) matching our channels-last (h4, w4, c) flatten."""
    k = w_torch.shape[0]
    return w_torch.reshape(k, c2, h4, w4).transpose(0, 2, 3, 1).reshape(k, h4 * w4 * c2)


def _pick_pos_tile(total, candidates=(512, 256, 128)):
    for t in candidates:
        if total % t == 0:
            return t
    return total


def _pick_batch_tile(n, hw4):
    """Smallest whole-sample lane tile that is a multiple of 128 (else full)."""
    for spt in range(1, n + 1):
        if n % spt == 0 and (spt * hw4) % 128 == 0:
            return spt * hw4
    return n * hw4


def vgg_nn_forward(x_nchw, params):
    n, cin, h, w = x_nchw.shape
    c1, c2, k = 8, 16, NUM_CLASSES
    h2, w2 = h // 2, w // 2
    h4, w4 = h2 // 2, w2 // 2
    hw4 = h4 * w4
    m1 = n * h2 * w2
    m4 = n * hw4
    feat = hw4 * c2

    x = jnp.transpose(x_nchw, (0, 2, 3, 1)).astype(jnp.float32)          # NHWC

    w1T = conv_weight_to_matrix_T(params["w1"]).astype(jnp.float32)      # (8, 9*cin)
    b1col = params["b1"].reshape(c1, 1).astype(jnp.float32)
    w2big = conv2_pool_weight(params["w2"]).astype(jnp.bfloat16)         # (64, 128)
    b2col = params["b2"].reshape(c2, 1).astype(jnp.float32)
    wK = fc_weight_lane_dense(params["wfc"], c2, h4, w4).astype(jnp.bfloat16)  # (K, feat)
    bfc = params["bfc"].reshape(1, k).astype(jnp.float32)

    # ---- A) conv1 + pool1: constant over the time loop, run once ----------
    p1g = pooled_conv1_patches(x)                          # (4, 9*cin, M1)
    cur1 = conv1_pool(p1g, w1T, b1col, m1, _pick_pos_tile(m1))   # (C1, M1)

    # one-time relayout to (pool2-group, channel)-major rows over the
    # compacted (n, h4, w4) lane grid
    cur1g = cur1.reshape(c1, n, h4, 2, w4, 2).transpose(3, 5, 0, 1, 2, 4)
    cur1g = cur1g.reshape(4 * c1, m4)

    masks = build_tap_masks(n, h4, w4)                     # (16, m4) f32, resident

    tile_b = _pick_batch_tile(n, hw4)
    num_btiles = m4 // tile_b

    # ---- B) layers 1-2, all time steps, batch-parallel fused kernel --------
    step_kernel = _make_step_kernel(w4, c1, c2)
    spk2_all = pl.pallas_call(
        step_kernel,
        out_shape=jax.ShapeDtypeStruct((NUM_STEPS, c2, m4), jnp.bfloat16),
        grid=(num_btiles, NUM_STEPS),
        in_specs=[
            pl.BlockSpec((4 * c1, tile_b), lambda b, t: (0, b)),     # resident per tile
            pl.BlockSpec((4 * c2, 16 * c1), lambda b, t: (0, 0)),    # resident
            pl.BlockSpec((c2, 1), lambda b, t: (0, 0)),              # resident
            pl.BlockSpec((16, tile_b), lambda b, t: (0, b)),         # resident per tile
        ],
        out_specs=pl.BlockSpec((1, c2, tile_b), lambda b, t: (t, 0, b)),
        scratch_shapes=[
            pltpu.VMEM((4 * c1, tile_b), jnp.float32),   # mem1
            pltpu.VMEM((c2, tile_b), jnp.float32),       # mem2 (compacted grid)
        ],
        compiler_params=pltpu.CompilerParams(
            dimension_semantics=("parallel", "arbitrary"),
            vmem_limit_bytes=32 * 1024 * 1024),
    )(cur1g, w2big, b2col, masks)

    # ---- layout glue: (T, C2, m4) -> (T, N, feat), (h4, w4, c) flatten -----
    x3_all = spk2_all.transpose(0, 2, 1).reshape(NUM_STEPS, n, h4, w4, c2)
    x3_all = x3_all.reshape(NUM_STEPS, n, feat)            # bf16 spikes (exact)

    # ---- C) fc1 + LIF3, all time steps, one fused kernel -------------------
    spk3_rec, mem3_rec = pl.pallas_call(
        _fc_step_kernel,
        out_shape=(jax.ShapeDtypeStruct((NUM_STEPS, n, k), jnp.float32),
                   jax.ShapeDtypeStruct((NUM_STEPS, n, k), jnp.float32)),
        grid=(NUM_STEPS,),
        in_specs=[
            pl.BlockSpec((1, n, feat), lambda t: (t, 0, 0)),
            pl.BlockSpec((k, feat), lambda t: (0, 0)),               # resident
            pl.BlockSpec((1, k), lambda t: (0, 0)),                  # resident
        ],
        out_specs=[pl.BlockSpec((1, n, k), lambda t: (t, 0, 0)),
                   pl.BlockSpec((1, n, k), lambda t: (t, 0, 0))],
        scratch_shapes=[pltpu.VMEM((n, k), jnp.float32)],            # mem3
        compiler_params=pltpu.CompilerParams(dimension_semantics=("arbitrary",)),
    )(x3_all, wK, bfc)

    return spk3_rec, mem3_rec


# -------------------------------------------------------------------- main --

if __name__ == "__main__":
    # Small shapes consistent with the module: batch=4, in_channels=1, 32x32
    # images (so fc1 sees 16 * (32//4) * (32//4) = 1024 features instead of the
    # hard-coded 16*64*48 used for 256x192 inputs in the original module).
    # batch=4 so the batch-parallel lane tiles of kernel B (2 samples = 128
    # lanes each) are actually exercised.
    N, CIN, H, W = 4, 1, 32, 32
    H4, W4 = H // 4, W // 4

    key = jax.random.PRNGKey(0)
    k1, k2, k3, k4, k5, k6, kx = jax.random.split(key, 7)
    params = {
        "w1": 0.3 * jax.random.normal(k1, (8, CIN, 3, 3), jnp.float32),
        "b1": 0.1 * jax.random.normal(k2, (8,), jnp.float32),
        "w2": 0.3 * jax.random.normal(k3, (16, 8, 3, 3), jnp.float32),
        "b2": 0.1 * jax.random.normal(k4, (16,), jnp.float32),
        "wfc": 0.05 * jax.random.normal(k5, (NUM_CLASSES, 16 * H4 * W4), jnp.float32),
        "bfc": 0.1 * jax.random.normal(k6, (NUM_CLASSES,), jnp.float32),
    }
    x = jax.random.normal(kx, (N, CIN, H, W), jnp.float32)

    fwd = jax.jit(vgg_nn_forward)
    spk3_rec, mem3_rec = fwd(x, params)
    jax.block_until_ready((spk3_rec, mem3_rec))

    assert spk3_rec.shape == (NUM_STEPS, N, NUM_CLASSES)
    assert mem3_rec.shape == (NUM_STEPS, N, NUM_CLASSES)
    print("KERNEL_OK")
</pallas_src>

<mosaic_0001>
module attributes {stable_mosaic.version = 11 : i64} {
  func.func @_conv1_pool_kernel(%arg0: i32, %arg1: memref<4x9x512xf32, #tpu.memory_space<vmem>>, %arg2: memref<8x9xf32, #tpu.memory_space<vmem>>, %arg3: memref<8x1xf32, #tpu.memory_space<vmem>>, %arg4: memref<8x512xf32, #tpu.memory_space<vmem>>) attributes {dimension_semantics = [#tpu.dimension_semantics<parallel>], iteration_bounds = array<i64: 2>, scalar_prefetch = 0 : i64, scratch_operands = 0 : i64, tpu.core_type = #tpu.core_type<tc>, window_params = [{transform_indices = @transform_0, window_bounds = array<i64: 4, 9, 512>}, {pipeline_mode = #tpu.pipeline_mode<synchronous>, transform_indices = @transform_1, window_bounds = array<i64: 8, 9>}, {pipeline_mode = #tpu.pipeline_mode<synchronous>, transform_indices = @transform_2, window_bounds = array<i64: 8, 1>}, {transform_indices = @transform_3, window_bounds = array<i64: 8, 512>}]} {
    %c0 = arith.constant 0 : index
    %c0_0 = arith.constant 0 : index
    %0 = vector.load %arg2[%c0, %c0_0] : memref<8x9xf32, #tpu.memory_space<vmem>>, vector<8x9xf32>
    %c0_1 = arith.constant 0 : index
    %c0_2 = arith.constant 0 : index
    %c0_3 = arith.constant 0 : index
    %1 = vector.load %arg1[%c0_1, %c0_2, %c0_3] : memref<4x9x512xf32, #tpu.memory_space<vmem>>, vector<1x9x512xf32>
    %2 = vector.shape_cast %1 : vector<1x9x512xf32> to vector<9x512xf32>
    %cst = arith.constant dense<0.000000e+00> : vector<8x512xf32>
    %3 = tpu.matmul %0, %2, %cst {dimension_numbers = #tpu.dot_dimension_numbers<[1], [0], [0], [1], [0, 0, 1, 1], [], []>} : vector<8x9xf32>, vector<9x512xf32>, vector<8x512xf32> -> vector<8x512xf32>
    %c0_4 = arith.constant 0 : index
    %c0_5 = arith.constant 0 : index
    %4 = vector.load %arg2[%c0_4, %c0_5] : memref<8x9xf32, #tpu.memory_space<vmem>>, vector<8x9xf32>
    %c1 = arith.constant 1 : index
    %c0_6 = arith.constant 0 : index
    %c0_7 = arith.constant 0 : index
    %5 = vector.load %arg1[%c1, %c0_6, %c0_7] : memref<4x9x512xf32, #tpu.memory_space<vmem>>, vector<1x9x512xf32>
    %6 = vector.shape_cast %5 : vector<1x9x512xf32> to vector<9x512xf32>
    %cst_8 = arith.constant dense<0.000000e+00> : vector<8x512xf32>
    %7 = tpu.matmul %4, %6, %cst_8 {dimension_numbers = #tpu.dot_dimension_numbers<[1], [0], [0], [1], [0, 0, 1, 1], [], []>} : vector<8x9xf32>, vector<9x512xf32>, vector<8x512xf32> -> vector<8x512xf32>
    %8 = arith.maximumf %3, %7 : vector<8x512xf32>
    %c0_9 = arith.constant 0 : index
    %c0_10 = arith.constant 0 : index
    %9 = vector.load %arg2[%c0_9, %c0_10] : memref<8x9xf32, #tpu.memory_space<vmem>>, vector<8x9xf32>
    %c2 = arith.constant 2 : index
    %c0_11 = arith.constant 0 : index
    %c0_12 = arith.constant 0 : index
    %10 = vector.load %arg1[%c2, %c0_11, %c0_12] : memref<4x9x512xf32, #tpu.memory_space<vmem>>, vector<1x9x512xf32>
    %11 = vector.shape_cast %10 : vector<1x9x512xf32> to vector<9x512xf32>
    %cst_13 = arith.constant dense<0.000000e+00> : vector<8x512xf32>
    %12 = tpu.matmul %9, %11, %cst_13 {dimension_numbers = #tpu.dot_dimension_numbers<[1], [0], [0], [1], [0, 0, 1, 1], [], []>} : vector<8x9xf32>, vector<9x512xf32>, vector<8x512xf32> -> vector<8x512xf32>
    %13 = arith.maximumf %8, %12 : vector<8x512xf32>
    %c0_14 = arith.constant 0 : index
    %c0_15 = arith.constant 0 : index
    %14 = vector.load %arg2[%c0_14, %c0_15] : memref<8x9xf32, #tpu.memory_space<vmem>>, vector<8x9xf32>
    %c3 = arith.constant 3 : index
    %c0_16 = arith.constant 0 : index
    %c0_17 = arith.constant 0 : index
    %15 = vector.load %arg1[%c3, %c0_16, %c0_17] : memref<4x9x512xf32, #tpu.memory_space<vmem>>, vector<1x9x512xf32>
    %16 = vector.shape_cast %15 : vector<1x9x512xf32> to vector<9x512xf32>
    %cst_18 = arith.constant dense<0.000000e+00> : vector<8x512xf32>
    %17 = tpu.matmul %14, %16, %cst_18 {dimension_numbers = #tpu.dot_dimension_numbers<[1], [0], [0], [1], [0, 0, 1, 1], [], []>} : vector<8x9xf32>, vector<9x512xf32>, vector<8x512xf32> -> vector<8x512xf32>
    %18 = arith.maximumf %13, %17 : vector<8x512xf32>
    %c0_19 = arith.constant 0 : index
    %c0_20 = arith.constant 0 : index
    %19 = vector.load %arg3[%c0_19, %c0_20] : memref<8x1xf32, #tpu.memory_space<vmem>>, vector<8x1xf32>
    %20 = vector.broadcast %19 : vector<8x1xf32> to vector<8x512xf32>
    %21 = arith.addf %18, %20 : vector<8x512xf32>
    %c0_21 = arith.constant 0 : index
    %c0_22 = arith.constant 0 : index
    %22 = vector.load %arg4[%c0_21, %c0_22] : memref<8x512xf32, #tpu.memory_space<vmem>>, vector<8x512xf32>
    tpu.vector_store %arg4[%c0_21, %c0_22], %21 {strides = array<i32>} : memref<8x512xf32, #tpu.memory_space<vmem>>, vector<8x512xf32>,
    return
  }
  func.func @transform_0(%arg0: i32) -> (i32, i32, i32) {
    %c0_i32 = arith.constant 0 : i32
    %c0_i32_0 = arith.constant 0 : i32
    %c0_i32_1 = arith.constant 0 : i32
    return %c0_i32, %c0_i32_0, %arg0 : i32, i32, i32
  }
  func.func @transform_1(%arg0: i32) -> (i32, i32) {
    %c0_i32 = arith.constant 0 : i32
    %c0_i32_0 = arith.constant 0 : i32
    %c0_i32_1 = arith.constant 0 : i32
    return %c0_i32, %c0_i32_0 : i32, i32
  }
  func.func @transform_2(%arg0: i32) -> (i32, i32) {
    %c0_i32 = arith.constant 0 : i32
    %c0_i32_0 = arith.constant 0 : i32
    %c0_i32_1 = arith.constant 0 : i32
    return %c0_i32, %c0_i32_0 : i32, i32
  }
  func.func @transform_3(%arg0: i32) -> (i32, i32) {
    %c0_i32 = arith.constant 0 : i32
    %c0_i32_0 = arith.constant 0 : i32
    return %c0_i32, %arg0 : i32, i32
  }
}

module attributes {stable_mosaic.version = 11 : i64} {
  func.func @step_kernel(%arg0: i32, %arg1: i32, %arg2: memref<32x128xf32, #tpu.memory_space<vmem>>, %arg3: memref<64x128xbf16, #tpu.memory_space<vmem>>, %arg4: memref<16x1xf32, #tpu.memory_space<vmem>>, %arg5: memref<16x128xf32, #tpu.memory_space<vmem>>, %arg6: memref<1x16x128xbf16, #tpu.memory_space<vmem>>, %arg7: memref<32x128xf32, #tpu.memory_space<vmem>>, %arg8: memref<16x128xf32, #tpu.memory_space<vmem>>) attributes {dimension_semantics = [#tpu.dimension_semantics<parallel>, #tpu.dimension_semantics<arbitrary>], iteration_bounds = array<i64: 2, 15>, scalar_prefetch = 0 : i64, scratch_operands = 2 : i64, tpu.core_type = #tpu.core_type<tc>, window_params = [{transform_indices = @transform_0, window_bounds = array<i64: 32, 128>}, {pipeline_mode = #tpu.pipeline_mode<synchronous>, transform_indices = @transform_1, window_bounds = array<i64: 64, 128>}, {pipeline_mode = #tpu.pipeline_mode<synchronous>, transform_indices = @transform_2, window_bounds = array<i64: 16, 1>}, {transform_indices = @transform_3, window_bounds = array<i64: 16, 128>}, {transform_indices = @transform_4, window_bounds = array<i64: 1, 16, 128>}]} {
    %c0_i32 = arith.constant 0 : i32
    %0 = arith.cmpi eq, %arg1, %c0_i32 : i32
    %1 = arith.extui %0 : i1 to i32
    %c0_i32_0 = arith.constant 0 : i32
    %2 = arith.cmpi ne, %1, %c0_i32_0 : i32
    scf.if %2 {
      %cst_44 = arith.constant 0.000000e+00 : f32
      %116 = vector.broadcast %cst_44 : f32 to vector<32x128xf32>
      %c0_45 = arith.constant 0 : index
      %c0_46 = arith.constant 0 : index
      %117 = vector.load %arg7[%c0_45, %c0_46] : memref<32x128xf32, #tpu.memory_space<vmem>>, vector<32x128xf32>
      tpu.vector_store %arg7[%c0_45, %c0_46], %116 {strides = array<i32>} : memref<32x128xf32, #tpu.memory_space<vmem>>, vector<32x128xf32>,
      %cst_47 = arith.constant 0.000000e+00 : f32
      %118 = vector.broadcast %cst_47 : f32 to vector<16x128xf32>
      %c0_48 = arith.constant 0 : index
      %c0_49 = arith.constant 0 : index
      %119 = vector.load %arg8[%c0_48, %c0_49] : memref<16x128xf32, #tpu.memory_space<vmem>>, vector<16x128xf32>
      tpu.vector_store %arg8[%c0_48, %c0_49], %118 {strides = array<i32>} : memref<16x128xf32, #tpu.memory_space<vmem>>, vector<16x128xf32>,
    } else {
    }
    %c0 = arith.constant 0 : index
    %c0_1 = arith.constant 0 : index
    %3 = vector.load %arg7[%c0, %c0_1] : memref<32x128xf32, #tpu.memory_space<vmem>>, vector<32x128xf32>
    %c0_2 = arith.constant 0 : index
    %c0_3 = arith.constant 0 : index
    %4 = vector.load %arg2[%c0_2, %c0_3] : memref<32x128xf32, #tpu.memory_space<vmem>>, vector<32x128xf32>
    %cst = arith.constant 0.949999988 : f32
    %5 = vector.broadcast %cst : f32 to vector<32x128xf32>
    %6 = arith.mulf %5, %3 : vector<32x128xf32>
    %7 = arith.addf %6, %4 : vector<32x128xf32>
    %cst_4 = arith.constant 1.000000e+00 : f32
    %8 = vector.broadcast %cst_4 : f32 to vector<32x128xf32>
    %9 = arith.cmpf ogt, %3, %8 : vector<32x128xf32>
    %cst_5 = arith.constant 1.000000e+00 : f32
    %cst_6 = arith.constant 0.000000e+00 : f32
    %10 = vector.broadcast %cst_5 : f32 to vector<32x128xf32>
    %11 = vector.broadcast %cst_6 : f32 to vector<32x128xf32>
    %12 = arith.select %9, %10, %11 : vector<32x128xi1>, vector<32x128xf32>
    %13 = arith.subf %7, %12 : vector<32x128xf32>
    %c0_7 = arith.constant 0 : index
    %c0_8 = arith.constant 0 : index
    %14 = vector.load %arg7[%c0_7, %c0_8] : memref<32x128xf32, #tpu.memory_space<vmem>>, vector<32x128xf32>
    tpu.vector_store %arg7[%c0_7, %c0_8], %13 {strides = array<i32>} : memref<32x128xf32, #tpu.memory_space<vmem>>, vector<32x128xf32>,
    %cst_9 = arith.constant 1.000000e+00 : f32
    %15 = vector.broadcast %cst_9 : f32 to vector<32x128xf32>
    %16 = arith.cmpf ogt, %13, %15 : vector<32x128xf32>
    %17 = arith.extui %16 : vector<32x128xi1> to vector<32x128xi32>
    %18 = arith.sitofp %17 : vector<32x128xi32> to vector<32x128xf32>
    %19 = vector.extract_strided_slice %18 {offsets = [24, 0], sizes = [8, 128], strides = [1, 1]} : vector<32x128xf32> to vector<8x128xf32>
    %c9_i32 = arith.constant 9 : i32
    %20 = tpu.dynamic_rotate %19 by %c9_i32 dim 1 : vector<8x128xf32>, i32 -> vector<8x128xf32>
    %c0_10 = arith.constant 0 : index
    %c0_11 = arith.constant 0 : index
    %21 = vector.load %arg5[%c0_10, %c0_11] : memref<16x128xf32, #tpu.memory_space<vmem>>, vector<1x128xf32>
    %22 = vector.broadcast %21 : vector<1x128xf32> to vector<8x128xf32>
    %23 = arith.mulf %20, %22 : vector<8x128xf32>
    %24 = vector.extract_strided_slice %18 {offsets = [16, 0], sizes = [8, 128], strides = [1, 1]} : vector<32x128xf32> to vector<8x128xf32>
    %c8_i32 = arith.constant 8 : i32
    %25 = tpu.dynamic_rotate %24 by %c8_i32 dim 1 : vector<8x128xf32>, i32 -> vector<8x128xf32>
    %c1 = arith.constant 1 : index
    %c0_12 = arith.constant 0 : index
    %26 = vector.load %arg5[%c1, %c0_12] : memref<16x128xf32, #tpu.memory_space<vmem>>, vector<1x128xf32>
    %27 = vector.broadcast %26 : vector<1x128xf32> to vector<8x128xf32>
    %28 = arith.mulf %25, %27 : vector<8x128xf32>
    %29 = vector.extract_strided_slice %18 {offsets = [24, 0], sizes = [8, 128], strides = [1, 1]} : vector<32x128xf32> to vector<8x128xf32>
    %c8_i32_13 = arith.constant 8 : i32
    %30 = tpu.dynamic_rotate %29 by %c8_i32_13 dim 1 : vector<8x128xf32>, i32 -> vector<8x128xf32>
    %c2 = arith.constant 2 : index
    %c0_14 = arith.constant 0 : index
    %31 = vector.load %arg5[%c2, %c0_14] : memref<16x128xf32, #tpu.memory_space<vmem>>, vector<1x128xf32>
    %32 = vector.broadcast %31 : vector<1x128xf32> to vector<8x128xf32>
    %33 = arith.mulf %30, %32 : vector<8x128xf32>
    %34 = vector.extract_strided_slice %18 {offsets = [16, 0], sizes = [8, 128], strides = [1, 1]} : vector<32x128xf32> to vector<8x128xf32>
    %c7_i32 = arith.constant 7 : i32
    %35 = tpu.dynamic_rotate %34 by %c7_i32 dim 1 : vector<8x128xf32>, i32 -> vector<8x128xf32>
    %c3 = arith.constant 3 : index
    %c0_15 = arith.constant 0 : index
    %36 = vector.load %arg5[%c3, %c0_15] : memref<16x128xf32, #tpu.memory_space<vmem>>, vector<1x128xf32>
    %37 = vector.broadcast %36 : vector<1x128xf32> to vector<8x128xf32>
    %38 = arith.mulf %35, %37 : vector<8x128xf32>
    %39 = vector.extract_strided_slice %18 {offsets = [8, 0], sizes = [8, 128], strides = [1, 1]} : vector<32x128xf32> to vector<8x128xf32>
    %c1_i32 = arith.constant 1 : i32
    %40 = tpu.dynamic_rotate %39 by %c1_i32 dim 1 : vector<8x128xf32>, i32 -> vector<8x128xf32>
    %c4 = arith.constant 4 : index
    %c0_16 = arith.constant 0 : index
    %41 = vector.load %arg5[%c4, %c0_16] : memref<16x128xf32, #tpu.memory_space<vmem>>, vector<1x128xf32>
    %42 = vector.broadcast %41 : vector<1x128xf32> to vector<8x128xf32>
    %43 = arith.mulf %40, %42 : vector<8x128xf32>
    %44 = vector.extract_strided_slice %18 {offsets = [0, 0], sizes = [8, 128], strides = [1, 1]} : vector<32x128xf32> to vector<8x128xf32>
    %45 = vector.extract_strided_slice %18 {offsets = [8, 0], sizes = [8, 128], strides = [1, 1]} : vector<32x128xf32> to vector<8x128xf32>
    %46 = vector.extract_strided_slice %18 {offsets = [0, 0], sizes = [8, 128], strides = [1, 1]} : vector<32x128xf32> to vector<8x128xf32>
    %c127_i32 = arith.constant 127 : i32
    %47 = tpu.dynamic_rotate %46 by %c127_i32 dim 1 : vector<8x128xf32>, i32 -> vector<8x128xf32>
    %c7 = arith.constant 7 : index
    %c0_17 = arith.constant 0 : index
    %48 = vector.load %arg5[%c7, %c0_17] : memref<16x128xf32, #tpu.memory_space<vmem>>, vector<1x128xf32>
    %49 = vector.broadcast %48 : vector<1x128xf32> to vector<8x128xf32>
    %50 = arith.mulf %47, %49 : vector<8x128xf32>
    %51 = vector.extract_strided_slice %18 {offsets = [24, 0], sizes = [8, 128], strides = [1, 1]} : vector<32x128xf32> to vector<8x128xf32>
    %c1_i32_18 = arith.constant 1 : i32
    %52 = tpu.dynamic_rotate %51 by %c1_i32_18 dim 1 : vector<8x128xf32>, i32 -> vector<8x128xf32>
    %c8 = arith.constant 8 : index
    %c0_19 = arith.constant 0 : index
    %53 = vector.load %arg5[%c8, %c0_19] : memref<16x128xf32, #tpu.memory_space<vmem>>, vector<1x128xf32>
    %54 = vector.broadcast %53 : vector<1x128xf32> to vector<8x128xf32>
    %55 = arith.mulf %52, %54 : vector<8x128xf32>
    %56 = vector.extract_strided_slice %18 {offsets = [16, 0], sizes = [8, 128], strides = [1, 1]} : vector<32x128xf32> to vector<8x128xf32>
    %57 = vector.extract_strided_slice %18 {offsets = [24, 0], sizes = [8, 128], strides = [1, 1]} : vector<32x128xf32> to vector<8x128xf32>
    %58 = vector.extract_strided_slice %18 {offsets = [16, 0], sizes = [8, 128], strides = [1, 1]} : vector<32x128xf32> to vector<8x128xf32>
    %c127_i32_20 = arith.constant 127 : i32
    %59 = tpu.dynamic_rotate %58 by %c127_i32_20 dim 1 : vector<8x128xf32>, i32 -> vector<8x128xf32>
    %c11 = arith.constant 11 : index
    %c0_21 = arith.constant 0 : index
    %60 = vector.load %arg5[%c11, %c0_21] : memref<16x128xf32, #tpu.memory_space<vmem>>, vector<1x128xf32>
    %61 = vector.broadcast %60 : vector<1x128xf32> to vector<8x128xf32>
    %62 = arith.mulf %59, %61 : vector<8x128xf32>
    %63 = vector.extract_strided_slice %18 {offsets = [8, 0], sizes = [8, 128], strides = [1, 1]} : vector<32x128xf32> to vector<8x128xf32>
    %c121_i32 = arith.constant 121 : i32
    %64 = tpu.dynamic_rotate %63 by %c121_i32 dim 1 : vector<8x128xf32>, i32 -> vector<8x128xf32>
    %c12 = arith.constant 12 : index
    %c0_22 = arith.constant 0 : index
    %65 = vector.load %arg5[%c12, %c0_22] : memref<16x128xf32, #tpu.memory_space<vmem>>, vector<1x128xf32>
    %66 = vector.broadcast %65 : vector<1x128xf32> to vector<8x128xf32>
    %67 = arith.mulf %64, %66 : vector<8x128xf32>
    %68 = vector.extract_strided_slice %18 {offsets = [0, 0], sizes = [8, 128], strides = [1, 1]} : vector<32x128xf32> to vector<8x128xf32>
    %c120_i32 = arith.constant 120 : i32
    %69 = tpu.dynamic_rotate %68 by %c120_i32 dim 1 : vector<8x128xf32>, i32 -> vector<8x128xf32>
    %c13 = arith.constant 13 : index
    %c0_23 = arith.constant 0 : index
    %70 = vector.load %arg5[%c13, %c0_23] : memref<16x128xf32, #tpu.memory_space<vmem>>, vector<1x128xf32>
    %71 = vector.broadcast %70 : vector<1x128xf32> to vector<8x128xf32>
    %72 = arith.mulf %69, %71 : vector<8x128xf32>
    %73 = vector.extract_strided_slice %18 {offsets = [8, 0], sizes = [8, 128], strides = [1, 1]} : vector<32x128xf32> to vector<8x128xf32>
    %c120_i32_24 = arith.constant 120 : i32
    %74 = tpu.dynamic_rotate %73 by %c120_i32_24 dim 1 : vector<8x128xf32>, i32 -> vector<8x128xf32>
    %c14 = arith.constant 14 : index
    %c0_25 = arith.constant 0 : index
    %75 = vector.load %arg5[%c14, %c0_25] : memref<16x128xf32, #tpu.memory_space<vmem>>, vector<1x128xf32>
    %76 = vector.broadcast %75 : vector<1x128xf32> to vector<8x128xf32>
    %77 = arith.mulf %74, %76 : vector<8x128xf32>
    %78 = vector.extract_strided_slice %18 {offsets = [0, 0], sizes = [8, 128], strides = [1, 1]} : vector<32x128xf32> to vector<8x128xf32>
    %c119_i32 = arith.constant 119 : i32
    %79 = tpu.dynamic_rotate %78 by %c119_i32 dim 1 : vector<8x128xf32>, i32 -> vector<8x128xf32>
    %c15 = arith.constant 15 : index
    %c0_26 = arith.constant 0 : index
    %80 = vector.load %arg5[%c15, %c0_26] : memref<16x128xf32, #tpu.memory_space<vmem>>, vector<1x128xf32>
    %81 = vector.broadcast %80 : vector<1x128xf32> to vector<8x128xf32>
    %82 = arith.mulf %79, %81 : vector<8x128xf32>
    %83 = tpu.concatenate %23, %28, %33, %38, %43, %44, %45, %50, %55, %56, %57, %62, %67, %72, %77, %82 in 0 : vector<8x128xf32>, vector<8x128xf32>, vector<8x128xf32>, vector<8x128xf32>, vector<8x128xf32>, vector<8x128xf32>, vector<8x128xf32>, vector<8x128xf32>, vector<8x128xf32>, vector<8x128xf32>, vector<8x128xf32>, vector<8x128xf32>, vector<8x128xf32>, vector<8x128xf32>, vector<8x128xf32>, vector<8x128xf32> -> vector<128x128xf32>
    %84 = arith.truncf %83 : vector<128x128xf32> to vector<128x128xbf16>
    %c0_27 = arith.constant 0 : index
    %c0_28 = arith.constant 0 : index
    %85 = vector.load %arg3[%c0_27, %c0_28] : memref<64x128xbf16, #tpu.memory_space<vmem>>, vector<64x128xbf16>
    %cst_29 = arith.constant dense<0.000000e+00> : vector<64x128xf32>
    %86 = tpu.matmul %85, %84, %cst_29 {dimension_numbers = #tpu.dot_dimension_numbers<[1], [0], [0], [1], [0, 0, 1, 1], [], []>} : vector<64x128xbf16>, vector<128x128xbf16>, vector<64x128xf32> -> vector<64x128xf32>
    %87 = vector.extract_strided_slice %86 {offsets = [0, 0], sizes = [16, 128], strides = [1, 1]} : vector<64x128xf32> to vector<16x128xf32>
    %88 = vector.extract_strided_slice %86 {offsets = [16, 0], sizes = [16, 128], strides = [1, 1]} : vector<64x128xf32> to vector<16x128xf32>
    %89 = arith.maximumf %87, %88 : vector<16x128xf32>
    %90 = vector.extract_strided_slice %86 {offsets = [32, 0], sizes = [16, 128], strides = [1, 1]} : vector<64x128xf32> to vector<16x128xf32>
    %91 = vector.extract_strided_slice %86 {offsets = [48, 0], sizes = [16, 128], strides = [1, 1]} : vector<64x128xf32> to vector<16x128xf32>
    %92 = arith.maximumf %90, %91 : vector<16x128xf32>
    %93 = arith.maximumf %89, %92 : vector<16x128xf32>
    %c0_30 = arith.constant 0 : index
    %c0_31 = arith.constant 0 : index
    %94 = vector.load %arg4[%c0_30, %c0_31] : memref<16x1xf32, #tpu.memory_space<vmem>>, vector<16x1xf32>
    %95 = vector.broadcast %94 : vector<16x1xf32> to vector<16x128xf32>
    %96 = arith.addf %93, %95 : vector<16x128xf32>
    %c0_32 = arith.constant 0 : index
    %c0_33 = arith.constant 0 : index
    %97 = vector.load %arg8[%c0_32, %c0_33] : memref<16x128xf32, #tpu.memory_space<vmem>>, vector<16x128xf32>
    %cst_34 = arith.constant 0.949999988 : f32
    %98 = vector.broadcast %cst_34 : f32 to vector<16x128xf32>
    %99 = arith.mulf %98, %97 : vector<16x128xf32>
    %100 = arith.addf %99, %96 : vector<16x128xf32>
    %cst_35 = arith.constant 1.000000e+00 : f32
    %101 = vector.broadcast %cst_35 : f32 to vector<16x128xf32>
    %102 = arith.cmpf ogt, %97, %101 : vector<16x128xf32>
    %cst_36 = arith.constant 1.000000e+00 : f32
    %cst_37 = arith.constant 0.000000e+00 : f32
    %103 = vector.broadcast %cst_36 : f32 to vector<16x128xf32>
    %104 = vector.broadcast %cst_37 : f32 to vector<16x128xf32>
    %105 = arith.select %102, %103, %104 : vector<16x128xi1>, vector<16x128xf32>
    %106 = arith.subf %100, %105 : vector<16x128xf32>
    %c0_38 = arith.constant 0 : index
    %c0_39 = arith.constant 0 : index
    %107 = vector.load %arg8[%c0_38, %c0_39] : memref<16x128xf32, #tpu.memory_space<vmem>>, vector<16x128xf32>
    tpu.vector_store %arg8[%c0_38, %c0_39], %106 {strides = array<i32>} : memref<16x128xf32, #tpu.memory_space<vmem>>, vector<16x128xf32>,
    %cst_40 = arith.constant 1.000000e+00 : f32
    %108 = vector.broadcast %cst_40 : f32 to vector<16x128xf32>
    %109 = arith.cmpf ogt, %106, %108 : vector<16x128xf32>
    %110 = arith.extui %109 : vector<16x128xi1> to vector<16x128xi32>
    %111 = arith.sitofp %110 : vector<16x128xi32> to vector<16x128xf32>
    %112 = arith.truncf %111 : vector<16x128xf32> to vector<16x128xbf16>
    %c0_41 = arith.constant 0 : index
    %c0_42 = arith.constant 0 : index
    %c0_43 = arith.constant 0 : index
    %113 = vector.load %arg6[%c0_41, %c0_42, %c0_43] : memref<1x16x128xbf16, #tpu.memory_space<vmem>>, vector<1x16x128xbf16>
    %114 = vector.shape_cast %113 : vector<1x16x128xbf16> to vector<16x128xbf16>
    %115 = vector.shape_cast %112 : vector<16x128xbf16> to vector<1x16x128xbf16>
    tpu.vector_store %arg6[%c0_41, %c0_42, %c0_43], %115 {strides = array<i32>} : memref<1x16x128xbf16, #tpu.memory_space<vmem>>, vector<1x16x128xbf16>,
    return
  }
  func.func @transform_0(%arg0: i32, %arg1: i32) -> (i32, i32) {
    %c0_i32 = arith.constant 0 : i32
    %c0_i32_0 = arith.constant 0 : i32
    return %c0_i32, %arg0 : i32, i32
  }
  func.func @transform_1(%arg0: i32, %arg1: i32) -> (i32, i32) {
    %c0_i32 = arith.constant 0 : i32
    %c0_i32_0 = arith.constant 0 : i32
    %c0_i32_1 = arith.constant 0 : i32
    return %c0_i32, %c0_i32_0 : i32, i32
  }
  func.func @transform_2(%arg0: i32, %arg1: i32) -> (i32, i32) {
    %c0_i32 = arith.constant 0 : i32
    %c0_i32_0 = arith.constant 0 : i32
    %c0_i32_1 = arith.constant 0 : i32
    return %c0_i32, %c0_i32_0 : i32, i32
  }
  func.func @transform_3(%arg0: i32, %arg1: i32) -> (i32, i32) {
    %c0_i32 = arith.constant 0 : i32
    %c0_i32_0 = arith.constant 0 : i32
    return %c0_i32, %arg0 : i32, i32
  }
  func.func @transform_4(%arg0: i32, %arg1: i32) -> (i32, i32, i32) {
    %c0_i32 = arith.constant 0 : i32
    %c0_i32_0 = arith.constant 0 : i32
    return %arg1, %c0_i32, %arg0 : i32, i32, i32
  }
}

module attributes {stable_mosaic.version = 11 : i64} {
  func.func @_fc_step_kernel(%arg0: i32, %arg1: memref<1x4x1024xbf16, #tpu.memory_space<vmem>>, %arg2: memref<5x1024xbf16, #tpu.memory_space<vmem>>, %arg3: memref<1x5xf32, #tpu.memory_space<vmem>>, %arg4: memref<1x4x5xf32, #tpu.memory_space<vmem>>, %arg5: memref<1x4x5xf32, #tpu.memory_space<vmem>>, %arg6: memref<4x5xf32, #tpu.memory_space<vmem>>) attributes {dimension_semantics = [#tpu.dimension_semantics<arbitrary>], iteration_bounds = array<i64: 15>, scalar_prefetch = 0 : i64, scratch_operands = 1 : i64, tpu.core_type = #tpu.core_type<tc>, window_params = [{transform_indices = @transform_0, window_bounds = array<i64: 1, 4, 1024>}, {pipeline_mode = #tpu.pipeline_mode<synchronous>, transform_indices = @transform_1, window_bounds = array<i64: 5, 1024>}, {pipeline_mode = #tpu.pipeline_mode<synchronous>, transform_indices = @transform_2, window_bounds = array<i64: 1, 5>}, {transform_indices = @transform_3, window_bounds = array<i64: 1, 4, 5>}, {transform_indices = @transform_4, window_bounds = array<i64: 1, 4, 5>}]} {
    %c0_i32 = arith.constant 0 : i32
    %0 = arith.cmpi eq, %arg0, %c0_i32 : i32
    %1 = arith.extui %0 : i1 to i32
    %c0_i32_0 = arith.constant 0 : i32
    %2 = arith.cmpi ne, %1, %c0_i32_0 : i32
    scf.if %2 {
      %cst_22 = arith.constant 0.000000e+00 : f32
      %31 = vector.broadcast %cst_22 : f32 to vector<4x5xf32>
      %c0_23 = arith.constant 0 : index
      %c0_24 = arith.constant 0 : index
      %32 = vector.load %arg6[%c0_23, %c0_24] : memref<4x5xf32, #tpu.memory_space<vmem>>, vector<4x5xf32>
      tpu.vector_store %arg6[%c0_23, %c0_24], %31 {strides = array<i32>} : memref<4x5xf32, #tpu.memory_space<vmem>>, vector<4x5xf32>,
    } else {
    }
    %c0 = arith.constant 0 : index
    %c0_1 = arith.constant 0 : index
    %c0_2 = arith.constant 0 : index
    %3 = vector.load %arg1[%c0, %c0_1, %c0_2] : memref<1x4x1024xbf16, #tpu.memory_space<vmem>>, vector<1x4x1024xbf16>
    %4 = vector.shape_cast %3 : vector<1x4x1024xbf16> to vector<4x1024xbf16>
    %c0_3 = arith.constant 0 : index
    %c0_4 = arith.constant 0 : index
    %5 = vector.load %arg2[%c0_3, %c0_4] : memref<5x1024xbf16, #tpu.memory_space<vmem>>, vector<5x1024xbf16>
    %cst = arith.constant dense<0.000000e+00> : vector<4x5xf32>
    %6 = tpu.matmul %4, %5, %cst {dimension_numbers = #tpu.dot_dimension_numbers<[1], [1], [0], [0], [0, 0, 1, 0], [], []>} : vector<4x1024xbf16>, vector<5x1024xbf16>, vector<4x5xf32> -> vector<4x5xf32>
    %c0_5 = arith.constant 0 : index
    %c0_6 = arith.constant 0 : index
    %7 = vector.load %arg3[%c0_5, %c0_6] : memref<1x5xf32, #tpu.memory_space<vmem>>, vector<1x5xf32>
    %8 = vector.broadcast %7 : vector<1x5xf32> to vector<4x5xf32>
    %9 = arith.addf %6, %8 : vector<4x5xf32>
    %c0_7 = arith.constant 0 : index
    %c0_8 = arith.constant 0 : index
    %10 = vector.load %arg6[%c0_7, %c0_8] : memref<4x5xf32, #tpu.memory_space<vmem>>, vector<4x5xf32>
    %cst_9 = arith.constant 0.949999988 : f32
    %11 = vector.broadcast %cst_9 : f32 to vector<4x5xf32>
    %12 = arith.mulf %11, %10 : vector<4x5xf32>
    %13 = arith.addf %12, %9 : vector<4x5xf32>
    %cst_10 = arith.constant 1.000000e+00 : f32
    %14 = vector.broadcast %cst_10 : f32 to vector<4x5xf32>
    %15 = arith.cmpf ogt, %10, %14 : vector<4x5xf32>
    %cst_11 = arith.constant 1.000000e+00 : f32
    %cst_12 = arith.constant 0.000000e+00 : f32
    %16 = vector.broadcast %cst_11 : f32 to vector<4x5xf32>
    %17 = vector.broadcast %cst_12 : f32 to vector<4x5xf32>
    %18 = arith.select %15, %16, %17 : vector<4x5xi1>, vector<4x5xf32>
    %19 = arith.subf %13, %18 : vector<4x5xf32>
    %c0_13 = arith.constant 0 : index
    %c0_14 = arith.constant 0 : index
    %20 = vector.load %arg6[%c0_13, %c0_14] : memref<4x5xf32, #tpu.memory_space<vmem>>, vector<4x5xf32>
    tpu.vector_store %arg6[%c0_13, %c0_14], %19 {strides = array<i32>} : memref<4x5xf32, #tpu.memory_space<vmem>>, vector<4x5xf32>,
    %cst_15 = arith.constant 1.000000e+00 : f32
    %21 = vector.broadcast %cst_15 : f32 to vector<4x5xf32>
    %22 = arith.cmpf ogt, %19, %21 : vector<4x5xf32>
    %23 = arith.extui %22 : vector<4x5xi1> to vector<4x5xi32>
    %24 = arith.sitofp %23 : vector<4x5xi32> to vector<4x5xf32>
    %c0_16 = arith.constant 0 : index
    %c0_17 = arith.constant 0 : index
    %c0_18 = arith.constant 0 : index
    %25 = vector.load %arg4[%c0_16, %c0_17, %c0_18] : memref<1x4x5xf32, #tpu.memory_space<vmem>>, vector<1x4x5xf32>
    %26 = vector.shape_cast %25 : vector<1x4x5xf32> to vector<4x5xf32>
    %27 = vector.shape_cast %24 : vector<4x5xf32> to vector<1x4x5xf32>
    tpu.vector_store %arg4[%c0_16, %c0_17, %c0_18], %27 {strides = array<i32>} : memref<1x4x5xf32, #tpu.memory_space<vmem>>, vector<1x4x5xf32>,
    %c0_19 = arith.constant 0 : index
    %c0_20 = arith.constant 0 : index
    %c0_21 = arith.constant 0 : index
    %28 = vector.load %arg5[%c0_19, %c0_20, %c0_21] : memref<1x4x5xf32, #tpu.memory_space<vmem>>, vector<1x4x5xf32>
    %29 = vector.shape_cast %28 : vector<1x4x5xf32> to vector<4x5xf32>
    %30 = vector.shape_cast %19 : vector<4x5xf32> to vector<1x4x5xf32>
    tpu.vector_store %arg5[%c0_19, %c0_20, %c0_21], %30 {strides = array<i32>} : memref<1x4x5xf32, #tpu.memory_space<vmem>>, vector<1x4x5xf32>,
    return
  }
  func.func @transform_0(%arg0: i32) -> (i32, i32, i32) {
    %c0_i32 = arith.constant 0 : i32
    %c0_i32_0 = arith.constant 0 : i32
    %c0_i32_1 = arith.constant 0 : i32
    return %arg0, %c0_i32, %c0_i32_0 : i32, i32, i32
  }
  func.func @transform_1(%arg0: i32) -> (i32, i32) {
    %c0_i32 = arith.constant 0 : i32
    %c0_i32_0 = arith.constant 0 : i32
    %c0_i32_1 = arith.constant 0 : i32
    return %c0_i32, %c0_i32_0 : i32, i32
  }
  func.func @transform_2(%arg0: i32) -> (i32, i32) {
    %c0_i32 = arith.constant 0 : i32
    %c0_i32_0 = arith.constant 0 : i32
    %c0_i32_1 = arith.constant 0 : i32
    return %c0_i32, %c0_i32_0 : i32, i32
  }
  func.func @transform_3(%arg0: i32) -> (i32, i32, i32) {
    %c0_i32 = arith.constant 0 : i32
    %c0_i32_0 = arith.constant 0 : i32
    %c0_i32_1 = arith.constant 0 : i32
    return %arg0, %c0_i32, %c0_i32_0 : i32, i32, i32
  }
  func.func @transform_4(%arg0: i32) -> (i32, i32, i32) {
    %c0_i32 = arith.constant 0 : i32
    %c0_i32_0 = arith.constant 0 : i32
    %c0_i32_1 = arith.constant 0 : i32
    return %arg0, %c0_i32, %c0_i32_0 : i32, i32, i32
  }
}

</mosaic_0001>

<bundles_post_ra>
// kernel: vgg_nn_forward.3
= control target key start
LH: loop header
LB: loop body
LE: loop exit
PB: predicated region body
PF: predicated region fallthrough
CT: control target
= control target key end

     0   :  { %s893_s12 = smov 0   ;;  %s895_s13 = smov 0   ;;  %s1103_s0 = inlined_call_operand.vmem [shape: f32[4,9,1024], index: 0, kind: input, shape index: {}]   ;;  %s1104_s1 = inlined_call_operand.vmem [shape: f32[8,9], index: 1, kind: input, shape index: {}]   ;;  %s1105_s2 = inlined_call_operand.vmem [shape: f32[8,1], index: 2, kind: input, shape index: {}]   ;;  %s1106_s3 = inlined_call_operand.vmem [shape: f32[8,1024], index: 3, kind: output, shape index: {}]  }
   0x1   :  { %s897_s14 = smov 0  }
   0x2 LB: > { %s752_s15 = sadd.s32 4294967295, %s870_s14   ;;  %s910_s16 = sadd.s32 1, %s870_s14   ;;  %s870_s14 = sphi %s897_s14, %s1109_s14   ;;  %s866_s13 = sphi %s895_s13, %s1108_s13   ;;  %s862_s12 = sphi %s893_s12, %s1107_s12  }
   0x3   : > { %s17_s17 = ssub.s32 %s870_s14, %s910_s16  ;;  %s20_s18 = sadd.s32 1, %s866_s13 }
   0x4   : > { %p18_p0 = scmp.eq.s32.totalorder %s17_s17, 0  ;;  %p27_p1 = scmp.ne.s32.totalorder %s866_s13, %s862_s12 }
   0x5   : > { %p28_p2 = scmp.eq.s32.totalorder %s870_s14, 0  ;;  %p755_p4 = scmp.ge.s32.totalorder %s870_s14, 2 }
   0x6   : > { %s919_s19 = scalar_select %p18_p0, %s866_s13, %s20_s18  }
   0x7   : > { %p29_p3 = por %p28_p2, %p27_p1  ;;  %127 = sbr.rel (%p755_p4) target bundleno = 48 (0x30), region = 24 }
   0xc   : > { %130 = sbr.rel (!%p29_p3) target bundleno = 48 (0x30), region = 28  ;;  %s132_s20 = sand.u32 (%p29_p3), 1, %s866_s13  }
   0xd   : > { %s821_s21 = sshll.u32 (%p29_p3), %s870_s14, 5  ;;  %s756_s22 = sshll.u32 (%p29_p3), %s132_s20, 8 }
   0xe   : > { %s927_s25 = scalar_lea.vmem (%p29_p3), %s1103_s0, %s821_s21  ;;  %s932_s26 = scalar_lea.vmem (%p29_p3), [#allocation2], %s756_s22 }
   0xf   : > { %v150_v0 = vld [vmem:[%s927_s25] sm:$0xff] (%p29_p3)  ;;  %v152_v1 = vld [vmem:[%s927_s25 + $0x8] sm:$0xff] (%p29_p3)  ;;  %v154_v2 = vld [vmem:[%s927_s25 + $0x10] sm:$0xff] (%p29_p3) }
  0x10   : > { %151 = vst [vmem:[%s932_s26] sm:$0xff] (%p29_p3), %v150_v0  ;;  %v156_v3 = vld [vmem:[%s927_s25 + $0x18] sm:$0xff] (%p29_p3)  ;;  %v158_v4 = vld [vmem:[%s927_s25 + $0x40] sm:$0xff] (%p29_p3)  ;;  %v160_v5 = vld [vmem:[%s927_s25 + $0x48] sm:$0xff] (%p29_p3) }
  0x11   : > { %153 = vst [vmem:[%s932_s26 + $0x8] sm:$0xff] %v152_v1  ;;  %v162_v6 = vld [vmem:[%s927_s25 + $0x50] sm:$0xff]  ;;  %v164_v7 = vld [vmem:[%s927_s25 + $0x58] sm:$0xff]  ;;  %v166_v8 = vld [vmem:[%s927_s25 + $0x80] sm:$0xff] }
  0x12   : > { %155 = vst [vmem:[%s932_s26 + $0x10] sm:$0xff] %v154_v2  ;;  %v168_v9 = vld [vmem:[%s927_s25 + $0x88] sm:$0xff]  ;;  %v170_v10 = vld [vmem:[%s927_s25 + $0x90] sm:$0xff]  ;;  %v172_v11 = vld [vmem:[%s927_s25 + $0x98] sm:$0xff] }
  0x13   : > { %157 = vst [vmem:[%s932_s26 + $0x18] sm:$0xff] %v156_v3  ;;  %v174_v12 = vld [vmem:[%s927_s25 + $0xc0] sm:$0xff]  ;;  %v176_v13 = vld [vmem:[%s927_s25 + $0xc8] sm:$0xff]  ;;  %v178_v14 = vld [vmem:[%s927_s25 + $0xd0] sm:$0xff] }
  0x14   : > { %159 = vst [vmem:[%s932_s26 + $0x20] sm:$0xff] %v158_v4  ;;  %v180_v15 = vld [vmem:[%s927_s25 + $0xd8] sm:$0xff]  ;;  %v182_v16 = vld [vmem:[%s927_s25 + $0x100] sm:$0xff]  ;;  %v184_v17 = vld [vmem:[%s927_s25 + $0x108] sm:$0xff] }
  0x15   : > { %161 = vst [vmem:[%s932_s26 + $0x28] sm:$0xff] %v160_v5  ;;  %v186_v18 = vld [vmem:[%s927_s25 + $0x110] sm:$0xff]  ;;  %v188_v19 = vld [vmem:[%s927_s25 + $0x118] sm:$0xff]  ;;  %v190_v20 = vld [vmem:[%s927_s25 + $0x140] sm:$0xff] }
  0x16   : > { %163 = vst [vmem:[%s932_s26 + $0x30] sm:$0xff] %v162_v6  ;;  %v192_v21 = vld [vmem:[%s927_s25 + $0x148] sm:$0xff]  ;;  %v194_v22 = vld [vmem:[%s927_s25 + $0x150] sm:$0xff]  ;;  %v196_v23 = vld [vmem:[%s927_s25 + $0x158] sm:$0xff] }
  0x17   : > { %165 = vst [vmem:[%s932_s26 + $0x38] sm:$0xff] %v164_v7  ;;  %v198_v24 = vld [vmem:[%s927_s25 + $0x180] sm:$0xff]  ;;  %v200_v25 = vld [vmem:[%s927_s25 + $0x188] sm:$0xff]  ;;  %v202_v26 = vld [vmem:[%s927_s25 + $0x190] sm:$0xff] }
  0x18   : > { %167 = vst [vmem:[%s932_s26 + $0x40] sm:$0xff] %v166_v8  ;;  %v204_v27 = vld [vmem:[%s927_s25 + $0x198] sm:$0xff]  ;;  %v206_v28 = vld [vmem:[%s927_s25 + $0x1c0] sm:$0xff]  ;;  %v208_v29 = vld [vmem:[%s927_s25 + $0x1c8] sm:$0xff] }
  0x19   : > { %169 = vst [vmem:[%s932_s26 + $0x48] sm:$0xff] %v168_v9  ;;  %v210_v30 = vld [vmem:[%s927_s25 + $0x1d0] sm:$0xff]  ;;  %v212_v31 = vld [vmem:[%s927_s25 + $0x1d8] sm:$0xff] }
  0x1a   : > { %171 = vst [vmem:[%s932_s26 + $0x50] sm:$0xff] %v170_v10 }
  0x1b   : > { %173 = vst [vmem:[%s932_s26 + $0x58] sm:$0xff] %v172_v11 }
  0x1c   : > { %175 = vst [vmem:[%s932_s26 + $0x60] sm:$0xff] %v174_v12 }
  0x1d   : > { %177 = vst [vmem:[%s932_s26 + $0x68] sm:$0xff] %v176_v13 }
  0x1e   : > { %179 = vst [vmem:[%s932_s26 + $0x70] sm:$0xff] %v178_v14 }
  0x1f   : > { %181 = vst [vmem:[%s932_s26 + $0x78] sm:$0xff] %v180_v15 }
  0x20   : > { %183 = vst [vmem:[%s932_s26 + $0x80] sm:$0xff] %v182_v16 }
  0x21   : > { %185 = vst [vmem:[%s932_s26 + $0x88] sm:$0xff] %v184_v17 }
  0x22   : > { %187 = vst [vmem:[%s932_s26 + $0x90] sm:$0xff] %v186_v18 }
  0x23   : > { %189 = vst [vmem:[%s932_s26 + $0x98] sm:$0xff] %v188_v19 }
  0x24   : > { %191 = vst [vmem:[%s932_s26 + $0xa0] sm:$0xff] %v190_v20 }
  0x25   : > { %193 = vst [vmem:[%s932_s26 + $0xa8] sm:$0xff] %v192_v21 }
  0x26   : > { %195 = vst [vmem:[%s932_s26 + $0xb0] sm:$0xff] %v194_v22 }
  0x27   : > { %197 = vst [vmem:[%s932_s26 + $0xb8] sm:$0xff] %v196_v23 }
  0x28   : > { %199 = vst [vmem:[%s932_s26 + $0xc0] sm:$0xff] %v198_v24 }
  0x29   : > { %201 = vst [vmem:[%s932_s26 + $0xc8] sm:$0xff] %v200_v25 }
  0x2a   : > { %203 = vst [vmem:[%s932_s26 + $0xd0] sm:$0xff] %v202_v26 }
  0x2b   : > { %205 = vst [vmem:[%s932_s26 + $0xd8] sm:$0xff] %v204_v27 }
  0x2c   : > { %207 = vst [vmem:[%s932_s26 + $0xe0] sm:$0xff] %v206_v28 }
  0x2d   : > { %209 = vst [vmem:[%s932_s26 + $0xe8] sm:$0xff] %v208_v29 }
  0x2e   : > { %211 = vst [vmem:[%s932_s26 + $0xf0] sm:$0xff] %v210_v30 }
  0x2f   : > { %213 = vst [vmem:[%s932_s26 + $0xf8] sm:$0xff] %v212_v31 }
  0x30 PF: > { %p759_p5 = scmp.ge.s32.totalorder %s870_s14, 1  ;;  %p218_p6 = scmp.lt.s32.totalorder %s870_s14, 3 }
  0x32   : > { %p219_p7 = pnand %p759_p5, %p218_p6 }
  0x33   : > { %s225_s27 = sand.u32 (!%p219_p7), 1, %s862_s12   ;;  %s761_s7 = sshll.u32 (!%p219_p7), %s752_s15, 2 }
  0x34   : > { %222 = sbr.rel (%p219_p7) target bundleno = 226 (0xe2), region = 51  ;;  %s760_s28 = sshll.u32 (!%p219_p7), %s225_s27, 8 }
  0x35   : > { %s1001_s4 = scalar_lea.vmem (!%p219_p7), [#allocation2], %s760_s28  ;;  %p250_p8 = scmp.lt.s32.totalorder (!%p219_p7), %s761_s7, 7 }
  0x39   : > { %vm268_vm0 = vcmask 1040384   ;;  %v676_v32 = vld [vmem:[%s1105_s2] sm:$0xff]  ;;  %v872_v33 = vmov 0   ;;  %v261_v35 = vld [vmem:[%s1001_s4 + $0x28] sm:$0x1]  ;;  %v258_v40 = vld [vmem:[%s1001_s4 + $0x10] sm:$0xff] }
  0x3a   : > { %847 = vset.pattern.permute.xlu0 %v872_v33  ;;  %v260_v34 = vld [vmem:[%s1001_s4 + $0x20] sm:$0x1]  ;;  %v262_v36 = vld [vmem:[%s1001_s4 + $0x30] sm:$0x1]  ;;  %765 = vmatpush.msk.msra.mxu1 %vm268_vm0, %v261_v35  ;;  %v263_v37 = vld [vmem:[%s1001_s4 + $0x38] sm:$0x1] }
  0x3b   : > { %679 = vperm.xlu0 %847, %v676_v32   ;;  %763 = vmatpush.msk.msra.mxu0 %vm268_vm0, %v260_v34  ;;  %v256_v38 = vld [vmem:[%s1001_s4] sm:$0xff]  ;;  %v257_v39 = vld [vmem:[%s1001_s4 + $0x8] sm:$0xff]  ;;  %v259_v41 = vld [vmem:[%s1001_s4 + $0x18] sm:$0xff]  ;;  %vm264_vm1 = vcmask 72704   ;;  %s1111_s7 = smov (!%p250_p8, %s761_s7), 7 }
  0x3c   : > { %767 = vmatpush.msk.msra.mxu2 %vm268_vm0, %v262_v36  ;;  %769 = vmatpush.msk.msra.mxu3 %vm268_vm0, %v263_v37  ;;  %v1018_v42 = vld [vmem:[%s1104_s1] sm:$0xff]  ;;  %v777_v43 = vld [vmem:[%s1001_s4 + $0x70] sm:$0x1]  ;;  %v778_v44 = vld [vmem:[%s1001_s4 + $0x78] sm:$0x1]  ;;  %s762_s8 = sshll.u32 %s1111_s7, 3 }
  0x3d   : > { %296 = vmatpush.msra.mxu0 %v256_v38  ;;  %316 = vmatpush.msra.mxu1 %v257_v39  ;;  %v775_v45 = vld [vmem:[%s1001_s4 + $0x60] sm:$0x1]  ;;  %v776_v46 = vld [vmem:[%s1001_s4 + $0x68] sm:$0x1]  ;;  %v773_v47 = vld [vmem:[%s1001_s4 + $0x50] sm:$0xff]  ;;  %s253_s11 = scalar_lea.vmem %s1106_s3, %s762_s8 }
  0x3e   : > { %336 = vmatpush.msra.mxu2 %v258_v40  ;;  %356 = vmatpush.msra.mxu3 %v259_v41  ;;  %v774_v48 = vld [vmem:[%s1001_s4 + $0x58] sm:$0xff]  ;;  %v771_v49 = vld [vmem:[%s1001_s4 + $0x40] sm:$0xff]  ;;  %v772_v50 = vld [vmem:[%s1001_s4 + $0x48] sm:$0xff] }
  0x3f   : > { %764 = vmatmul.msk.f32.vlgmr.msra.gmra.mxu0 %vm264_vm1, %v1018_v42  ;;  %766 = vmatmul.msk.f32.vlgmr.msra.gmra.mxu1 %vm264_vm1, %v1018_v42  ;;  %v793_v51 = vld [vmem:[%s1001_s4 + $0xb0] sm:$0x1]  ;;  %v794_v52 = vld [vmem:[%s1001_s4 + $0xb8] sm:$0x1]  ;;  %v791_v53 = vld [vmem:[%s1001_s4 + $0xa0] sm:$0x1] }
  0x40   : > { %768 = vmatmul.msk.f32.vlgmr.msra.gmra.mxu2 %vm264_vm1, %v1018_v42  ;;  %770 = vmatmul.msk.f32.vlgmr.msra.gmra.mxu3 %vm264_vm1, %v1018_v42  ;;  %v792_v54 = vld [vmem:[%s1001_s4 + $0xa8] sm:$0x1]  ;;  %v789_v55 = vld [vmem:[%s1001_s4 + $0x90] sm:$0xff]  ;;  %v790_v56 = vld [vmem:[%s1001_s4 + $0x98] sm:$0xff] }
  0x41   : > { %783 = vmatpush.msk.msrb.mxu2 %vm268_vm0, %v777_v43  ;;  %785 = vmatpush.msk.msrb.mxu3 %vm268_vm0, %v778_v44  ;;  %v787_v57 = vld [vmem:[%s1001_s4 + $0x80] sm:$0xff]  ;;  %v788_v58 = vld [vmem:[%s1001_s4 + $0x88] sm:$0xff]  ;;  %v809_v59 = vld [vmem:[%s1001_s4 + $0xf0] sm:$0x1] }
  0x42   : > { %779 = vmatpush.msk.msrb.mxu0 %vm268_vm0, %v775_v45  ;;  %781 = vmatpush.msk.msrb.mxu1 %vm268_vm0, %v776_v46  ;;  %v810_v60 = vld [vmem:[%s1001_s4 + $0xf8] sm:$0x1]  ;;  %v807_v61 = vld [vmem:[%s1001_s4 + $0xe0] sm:$0x1]  ;;  %v808_v62 = vld [vmem:[%s1001_s4 + $0xe8] sm:$0x1] }
  0x43   : > { %437 = vmatpush.msrb.mxu2 %v773_v47  ;;  %457 = vmatpush.msrb.mxu3 %v774_v48  ;;  %v805_v63 = vld [vmem:[%s1001_s4 + $0xd0] sm:$0xff]  ;;  %v806_v0 = vld [vmem:[%s1001_s4 + $0xd8] sm:$0xff]  ;;  %v803_v1 = vld [vmem:[%s1001_s4 + $0xc0] sm:$0xff] }
  0x44   : > { %397 = vmatpush.msrb.mxu0 %v771_v49  ;;  %417 = vmatpush.msrb.mxu1 %v772_v50  ;;  %v804_v2 = vld [vmem:[%s1001_s4 + $0xc8] sm:$0xff] }
  0x45   : > { %799 = vmatpush.msk.msra.mxu2 %vm268_vm0, %v793_v51  ;;  %801 = vmatpush.msk.msra.mxu3 %vm268_vm0, %v794_v52 }
  0x46   : > { %795 = vmatpush.msk.msra.mxu0 %vm268_vm0, %v791_v53  ;;  %797 = vmatpush.msk.msra.mxu1 %vm268_vm0, %v792_v54 }
  0x47   : > { %780 = vmatmul.msk.f32.vlgmr.msrb.gmra.mxu0 %vm264_vm1, %v1018_v42  ;;  %782 = vmatmul.msk.f32.vlgmr.msrb.gmra.mxu1 %vm264_vm1, %v1018_v42 }
  0x48   : > { %784 = vmatmul.msk.f32.vlgmr.msrb.gmra.mxu2 %vm264_vm1, %v1018_v42  ;;  %786 = vmatmul.msk.f32.vlgmr.msrb.gmra.mxu3 %vm264_vm1, %v1018_v42 }
  0x49   : > { %542 = vmatpush.msra.mxu2 %v789_v55  ;;  %562 = vmatpush.msra.mxu3 %v790_v56 }
  0x4a   : > { %502 = vmatpush.msra.mxu0 %v787_v57  ;;  %522 = vmatpush.msra.mxu1 %v788_v58 }
  0x4b   : > { %815 = vmatpush.msk.msrb.mxu2 %vm268_vm0, %v809_v59  ;;  %817 = vmatpush.msk.msrb.mxu3 %vm268_vm0, %v810_v60 }
  0x4c   : > { %811 = vmatpush.msk.msrb.mxu0 %vm268_vm0, %v807_v61  ;;  %813 = vmatpush.msk.msrb.mxu1 %vm268_vm0, %v808_v62 }
  0x4d   : > { %647 = vmatpush.msrb.mxu2 %v805_v63  ;;  %667 = vmatpush.msrb.mxu3 %v806_v0 }
  0x4e   : > { %607 = vmatpush.msrb.mxu0 %v803_v1  ;;  %627 = vmatpush.msrb.mxu1 %v804_v2 }
  0x4f   : > { %796 = vmatmul.msk.f32.vlgmr.msra.gmra.mxu0 %vm264_vm1, %v1018_v42  ;;  %798 = vmatmul.msk.f32.vlgmr.msra.gmra.mxu1 %vm264_vm1, %v1018_v42 }
  0x50   : > { %800 = vmatmul.msk.f32.vlgmr.msra.gmra.mxu2 %vm264_vm1, %v1018_v42  ;;  %802 = vmatmul.msk.f32.vlgmr.msra.gmra.mxu3 %vm264_vm1, %v1018_v42 }
  0x57   : > { %812 = vmatmul.msk.f32.vlgmr.msrb.gmra.mxu0 %vm264_vm1, %v1018_v42  ;;  %814 = vmatmul.msk.f32.vlgmr.msrb.gmra.mxu1 %vm264_vm1, %v1018_v42 }
  0x58   : > { %816 = vmatmul.msk.f32.vlgmr.msrb.gmra.mxu2 %vm264_vm1, %v1018_v42  ;;  %818 = vmatmul.msk.f32.vlgmr.msrb.gmra.mxu3 %vm264_vm1, %v1018_v42 }
  0xad   : > { %v680_v15 = vpop.permute.xlu0 %679 }
  0xbc   : > { %v298_v3 = vpop.f32.mrf.mxu0  ;;  %v318_v4 = vpop.f32.mrf.mxu1 }
  0xc3   : > { %v338_v5 = vpop.f32.mrf.mxu2  ;;  %v358_v6 = vpop.f32.mrf.mxu3 }
  0xc4   : > { %v399_v7 = vpop.f32.mrf.mxu0  ;;  %v419_v8 = vpop.f32.mrf.mxu1 }
  0xc5   : > { %v462_v13 = vmax.f32 %v298_v3, %v399_v7  ;;  %v463_v14 = vmax.f32 %v318_v4, %v419_v8 }
  0xcb   : > { %v439_v9 = vpop.f32.mrf.mxu2  ;;  %v459_v10 = vpop.f32.mrf.mxu3 }
  0xcc   : > { %v504_v11 = vpop.f32.mrf.mxu0  ;;  %v524_v12 = vpop.f32.mrf.mxu1  ;;  %v464_v26 = vmax.f32 %v338_v5, %v439_v9  ;;  %v465_v27 = vmax.f32 %v358_v6, %v459_v10 }
  0xcd   : > { %v567_v16 = vmax.f32 %v462_v13, %v504_v11  ;;  %v568_v17 = vmax.f32 %v463_v14, %v524_v12 }
  0xd3   : > { %v544_v18 = vpop.f32.mrf.mxu2  ;;  %v564_v19 = vpop.f32.mrf.mxu3 }
  0xd4   : > { %v609_v20 = vpop.f32.mrf.mxu0  ;;  %v629_v21 = vpop.f32.mrf.mxu1  ;;  %v569_v28 = vmax.f32 %v464_v26, %v544_v18  ;;  %v570_v29 = vmax.f32 %v465_v27, %v564_v19 }
  0xd5   : > { %v672_v22 = vmax.f32 %v567_v16, %v609_v20  ;;  %v673_v23 = vmax.f32 %v568_v17, %v629_v21 }
  0xd7   : > { %v682_v24 = vadd.f32 %v680_v15, %v672_v22  ;;  %v683_v25 = vadd.f32 %v680_v15, %v673_v23 }
  0xd9   : > { %686 = vst [vmem:[%s253_s11] sm:$0xff] %v682_v24 }
  0xda   : > { %687 = vst [vmem:[%s253_s11 + $0x8] sm:$0xff] %v683_v25 }
  0xdb   : > { %v649_v30 = vpop.f32.mrf.mxu2  ;;  %v669_v31 = vpop.f32.mrf.mxu3 }
  0xdc   : > { %v674_v32 = vmax.f32 %v569_v28, %v649_v30  ;;  %v675_v33 = vmax.f32 %v570_v29, %v669_v31 }
  0xde   : > { %v684_v34 = vadd.f32 %v680_v15, %v674_v32  ;;  %v685_v35 = vadd.f32 %v680_v15, %v675_v33 }
  0xe0   : > { %688 = vst [vmem:[%s253_s11 + $0x10] sm:$0xff] %v684_v34 }
  0xe1   : > { %689 = vst [vmem:[%s253_s11 + $0x18] sm:$0xff] %v685_v35 }
  0xe2 PF: > { %p10_p9 = scmp.ge.s32.totalorder %s910_s16, 4   ;;  %s1107_s12 = smov %s866_s13 }
  0xe3   : > { %s1108_s13 = smov %s919_s19  ;;  %s1109_s14 = smov %s910_s16 }
  0xe4   :  { %12 = sbr.rel (!%p10_p9) target bundleno = 2 (0x2), region = 93 }

// kernel: tile.66
= control target key start
LH: loop header
LB: loop body
LE: loop exit
PB: predicated region body
PF: predicated region fallthrough
CT: control target
= control target key end

     0   :  { %s22_s0 = inlined_call_operand.vmem [shape: f32[64], index: 0, kind: input, shape index: {}]   ;;  %s23_s1 = inlined_call_operand.vmem [shape: f32[4,64], index: 1, kind: output, shape index: {}]  }
   0x1   :  { %v4_v0 = vld [vmem:[%s22_s0] ss:$0 sm:$0xff] }
   0x2   :  { %5 = vst [vmem:[%s23_s1] sm:$0xf] %v4_v0 }

// kernel: tile.112
= control target key start
LH: loop header
LB: loop body
LE: loop exit
PB: predicated region body
PF: predicated region fallthrough
CT: control target
= control target key end

     0   :  { %s6_s8 = smov 3  ;;  %vm8_vm0 = vcmask 523264   ;;  %s31_s9 = smov 64   ;;  %vm15_vm1 = vcmask 1048064   ;;  %s51_s0 = inlined_call_operand.vmem [shape: f32[4,64], index: 0, kind: input, shape index: {}]   ;;  %s52_s1 = inlined_call_operand.vmem [shape: f32[1,256], index: 1, kind: output, shape index: {}]  }
   0x1   :  { %v4_v0 = vld [vmem:[%s51_s0] sm:$0xf]  ;;  %s11_s0 = smov 3 }
   0x2   :  { %5 = vst [vmem:[#allocation1] sm:$0xf] %v4_v0 }
   0x9   :  { %v12_v1 = vld [vmem:[#allocation1 + $0x1] ss:$2 sm:%s11_s0]   ;;  %v7_v2 = vld [vmem:[#allocation1] ss:$2 sm:%s6_s8]  }
   0xa   :  { %13 = vrot.lane.b32.xlu0 %v12_v1, %s31_s9  ;;  %9 = vst.msk [vmem:[#allocation0] ss:$8 sm:$0x3] %vm8_vm0, %v7_v2  }
  0x7c   :  { %v14_v3 = vpop.permute.xlu0 %13  }
  0x7d   :  { %16 = vst.msk [vmem:[#allocation0] ss:$8 sm:$0x3] %vm15_vm1, %v14_v3  }
  0x84   :  { %v19_v4 = vld [vmem:[#allocation0] sm:$0x1]  ;;  %v24_v5 = vld [vmem:[#allocation0 + $0x8] sm:$0x1] }
  0x85   :  { %22 = vst [vmem:[%s52_s1] sm:$0x1] %v19_v4 }
  0x86   :  { %29 = vst [vmem:[%s52_s1 + $0x1] sm:$0x1] %v24_v5 }

// kernel: vgg_nn_forward.4
= control target key start
LH: loop header
LB: loop body
LE: loop exit
PB: predicated region body
PF: predicated region fallthrough
CT: control target
= control target key end

     0   :  { %s975_s15 = smov 0   ;;  %s977_s16 = smov 0   ;;  %s1198_s0 = inlined_call_operand.vmem [shape: f32[32,256], index: 0, kind: input, shape index: {}]   ;;  %s1199_s1 = inlined_call_operand.vmem [shape: bf16[64,128], index: 1, kind: input, shape index: {}]   ;;  %s1200_s2 = inlined_call_operand.vmem [shape: f32[16,1], index: 2, kind: input, shape index: {}]   ;;  %s1201_s3 = inlined_call_operand.vmem [shape: f32[16,256], index: 3, kind: input, shape index: {}]   ;;  %s1202_s4 = inlined_call_operand.vmem [shape: bf16[15,16,256], index: 4, kind: output, shape index: {}]  }
   0x1   :  { %s979_s17 = smov 0   ;;  %s981_s18 = smov 0  }
   0x2   :  { %s983_s19 = smov 0   ;;  %s985_s20 = smov 0  }
   0x3   :  { %s987_s21 = smov 0   ;;  %s989_s22 = smov 0  }
   0x4   :  { %s991_s23 = smov 0  }
   0x5 LB: > { %s23_s24 = sadd.s32 1, %s927_s21  ;;  %s26_s25 = sadd.s32 1, %s931_s22  ;;  %s935_s23 = sphi %s991_s23, %s14_s23   ;;  %s931_s22 = sphi %s989_s22, %s1212_s22   ;;  %s927_s21 = sphi %s987_s21, %s1211_s21   ;;  %s923_s20 = sphi %s985_s20, %s1210_s20   ;;  %s919_s19 = sphi %s983_s19, %s1209_s19   ;;  %s915_s18 = sphi %s981_s18, %s1208_s18   ;;  %s911_s17 = sphi %s979_s17, %s1207_s17   ;;  %s907_s16 = sphi %s977_s16, %s1206_s16   ;;  %s903_s15 = sphi %s975_s15, %s1205_s15  }
   0x6   : > { %p24_p0 = scmp.ge.s32.totalorder %s23_s24, 15  ;;  %p40_p1 = scmp.ne.s32.totalorder %s915_s18, %s911_s17 }
   0x7   : > { %s683_s26 = sadd.s32 4294967295, %s935_s23   ;;  %p41_p2 = scmp.eq.s32.totalorder %s935_s23, 0 }
   0x8   : > { %s1214_s24 = smov (%p24_p0, %s23_s24), 0  ;;  %s1216_s25 = smov (!%p24_p0, %s26_s25), %s931_s22 }
   0x9   : > { %p28_p3 = scmp.ge.s32.totalorder %s1216_s25, 2  ;;  %s124_s27 = ssub.s32 %s927_s21, %s1214_s24 }
   0xa   : > { %p1031_p4 = por %p41_p2, %p40_p1  ;;  %p139_p5 = scmp.ne.s32.totalorder %s907_s16, %s903_s15 }
   0xb   : > { %s1218_s25 = smov (%p28_p3, %s1216_s25), 0  ;;  %s33_s29 = sadd.s32 1, %s915_s18 }
   0xc   : > { %p140_p6 = scmp.eq.s32.totalorder %s683_s26, 29  ;;  %s30_s30 = ssub.s32 %s931_s22, %s1218_s25 }
   0xd   : > { %s129_s5 = sadd.s32 1, %s907_s16  ;;  %p31_p7 = scmp.eq.s32.totalorder %s30_s30, 0 }
   0xe   : > { %s126_s6 = sor.u32 %s124_s27, %s30_s30  ;;  %p1043_p9 = por %p140_p6, %p139_p5 }
   0xf   : > { %p127_p8 = scmp.eq.s32.totalorder %s126_s6, 0  ;;  %p686_p10 = scmp.ge.s32.totalorder %s935_s23, 30 }
  0x10   : > { %s1048_s8 = scalar_select %p31_p7, %s915_s18, %s33_s29  }
  0x11   : > { %s1051_s9 = scalar_select %p127_p8, %s907_s16, %s129_s5  }
  0x12   : > { %168 = sbr.rel (%p686_p10) target bundleno = 37 (0x25), region = 24 }
  0x17   : > { %171 = sbr.rel (!%p1031_p4) target bundleno = 31 (0x1f), region = 28  ;;  %s173_s10 = sand.u32 (%p1031_p4), 1, %s915_s18  }
  0x18   : > { %s688_s11 = sshll.u32 (%p1031_p4), %s931_s22, 3  ;;  %s687_s12 = sshll.u32 (%p1031_p4), %s173_s10, 5 }
  0x19   : > { %s177_s26 = scalar_lea.vmem (%p1031_p4), %s1198_s0, %s688_s11  ;;  %s175_s27 = scalar_lea.vmem (%p1031_p4), [#allocation4], %s687_s12 }
  0x1a   : > { %v212_v0 = vld [vmem:[%s177_s26] sm:$0xff] (%p1031_p4)  ;;  %v214_v1 = vld [vmem:[%s177_s26 + $0x10] sm:$0xff] (%p1031_p4) }
  0x1b   : > { %v216_v2 = vld [vmem:[%s177_s26 + $0x20] sm:$0xff] (%p1031_p4)  ;;  %213 = vst [vmem:[%s175_s27] sm:$0xff] (%p1031_p4), %v212_v0  ;;  %v218_v3 = vld [vmem:[%s177_s26 + $0x30] sm:$0xff] (%p1031_p4) }
  0x1c   : > { %215 = vst [vmem:[%s175_s27 + $0x8] sm:$0xff] %v214_v1 }
  0x1d   : > { %217 = vst [vmem:[%s175_s27 + $0x10] sm:$0xff] %v216_v2 }
  0x1e   : > { %219 = vst [vmem:[%s175_s27 + $0x18] sm:$0xff] %v218_v3 }
  0x1f PF: > { %225 = sbr.rel (!%p1031_p4) target bundleno = 37 (0x25), region = 66  ;;  %s227_s29 = sand.u32 (%p1031_p4), 1, %s915_s18  }
  0x20   : > { %s690_s30 = sshll.u32 (%p1031_p4), %s931_s22, 3  ;;  %s689_s5 = sshll.u32 (%p1031_p4), %s227_s29, 4 }
  0x21   : > { %s231_s11 = scalar_lea.vmem (%p1031_p4), %s1201_s3, %s690_s30  ;;  %s229_s12 = scalar_lea.vmem (%p1031_p4), [#allocation5], %s689_s5 }
  0x22   : > { %v262_v4 = vld [vmem:[%s231_s11] sm:$0xff] (%p1031_p4)  ;;  %v264_v5 = vld [vmem:[%s231_s11 + $0x10] sm:$0xff] (%p1031_p4) }
  0x23   : > { %263 = vst [vmem:[%s229_s12] sm:$0xff] (%p1031_p4), %v262_v4 }
  0x24   : > { %265 = vst [vmem:[%s229_s12 + $0x8] sm:$0xff] %v264_v5 }
  0x25 PF: > { %p691_p11 = scmp.ge.s32.totalorder %s935_s23, 1  ;;  %p270_p12 = scmp.lt.s32.totalorder %s935_s23, 31 }
  0x27   : > { %p271_p13 = pnand %p691_p11, %p270_p12 }
  0x28   : > { %s277_s28 = sand.u32 (!%p271_p13), 1, %s911_s17   ;;  %s309_s13 = sand.u32 (!%p271_p13), 1, %s903_s15  }
  0x29   : > { %274 = sbr.rel (%p271_p13) target bundleno = 392 (0x188), region = 104  ;;  %s692_s14 = sshll.u32 (!%p271_p13), %s277_s28, 5 }
  0x2a   : > { %s693_s26 = sshll.u32 (!%p271_p13), %s277_s28, 4  ;;  %s694_s27 = sshll.u32 (!%p271_p13), %s309_s13, 3 }
  0x2b   : > { %s1072_s29 = scalar_lea.vmem (!%p271_p13), [#allocation4], %s692_s14  ;;  %s1074_s30 = scalar_lea.vmem (!%p271_p13), [#allocation5], %s693_s26 }
  0x2c   : > { %s1076_s5 = scalar_lea.vmem (!%p271_p13), [#allocation6], %s694_s27  ;;  %p695_p0 = scmp.ne.s32.totalorder (!%p271_p13), %s919_s19, 0 }
  0x2e   : > { %315 = sbr.rel (%p695_p0) target bundleno = 58 (0x3a), region = 116 }
  0x33   : > { %v937_v6 = vmov 0.0  }
  0x34   : > { %316 = vst [vmem:[#allocation2 + $0x10] sm:$0xff] %v937_v6 }
  0x35   : > { %317 = vst [vmem:[#allocation2] sm:$0xff] %v937_v6 }
  0x36   : > { %318 = vst [vmem:[#allocation2 + $0x18] sm:$0xff] %v937_v6 }
  0x37   : > { %319 = vst [vmem:[#allocation2 + $0x8] sm:$0xff] %v937_v6 }
  0x38   : > { %320 = vst [vmem:[#allocation3] sm:$0xff] %v937_v6 }
  0x39   : > { %321 = vst [vmem:[#allocation3 + $0x8] sm:$0xff] %v937_v6 }
  0x3a PF: > { %v327_v8 = vld [vmem:[%s1072_s29 + $0x8] sm:$0xff]  ;;  %v326_v11 = vld [vmem:[%s1072_s29] sm:$0xff]  ;;  %v938_v13 = vmov 0.0   ;;  %v328_v16 = vld [vmem:[%s1072_s29 + $0x10] sm:$0xff]  ;;  %s939_s15 = smov 121   ;;  %s940_s17 = smov 120  }
  0x3b   : > { %v322_v9 = vld [vmem:[#allocation2 + $0x10] sm:$0xff]  ;;  %v329_v22 = vld [vmem:[%s1072_s29 + $0x18] sm:$0xff]  ;;  %s941_s6 = smov 127   ;;  %s942_s10 = smov 119   ;;  %v501_v53 = vld [vmem:[%s1200_s2] sm:$0xff]  ;;  %v947_v57 = vmov 0  }
  0x3c   : > { %v323_v7 = vld [vmem:[#allocation2] sm:$0xff]  ;;  %v330_v12 = vmul.f32 0.95, %v322_v9  ;;  %vm338_vm1 = vcmp.gt.f32.partialorder %v322_v9, 1.0  ;;  %s943_s11 = smov 1   ;;  %s944_s12 = smov 8   ;;  %851 = vset.pattern.permute.xlu0 %v947_v57  ;;  %852 = vset.pattern.permute.xlu1 %v947_v57 }
  0x3d   : > { %v331_v10 = vmul.f32 0.95, %v323_v7  ;;  %vm339_vm0 = vcmp.gt.f32.partialorder %v323_v7, 1.0  ;;  %v324_v15 = vld [vmem:[#allocation2 + $0x18] sm:$0xff]  ;;  %v342_v19 = vsel %vm338_vm1, 1.0, %v938_v13  ;;  %s945_s28 = smov 7  }
  0x3e   : > { %v343_v14 = vsel %vm339_vm0, 1.0, %v938_v13  ;;  %v334_v18 = vadd.f32 %v330_v12, %v326_v11  ;;  %v332_v20 = vmul.f32 0.95, %v324_v15  ;;  %v325_v21 = vld [vmem:[#allocation2 + $0x8] sm:$0xff]  ;;  %vm340_vm2 = vcmp.gt.f32.partialorder %v324_v15, 1.0  ;;  %s946_s13 = smov 9  }
  0x3f   : > { %v335_v17 = vadd.f32 %v331_v10, %v327_v8  ;;  %v333_v23 = vmul.f32 0.95, %v325_v21  ;;  %vm341_vm3 = vcmp.gt.f32.partialorder %v325_v21, 1.0  ;;  %v344_v26 = vsel %vm340_vm2, 1.0, %v938_v13  ;;  %v854_v39 = vld [vmem:[%s1074_s30 + $0xe] ss:$0 sm:$0xff] }
  0x40   : > { %v336_v25 = vadd.f32 %v332_v20, %v328_v16  ;;  %v1088_v27 = vsub.f32 %v334_v18, %v342_v19  ;;  %v345_v29 = vsel %vm341_vm3, 1.0, %v938_v13  ;;  %v856_v40 = vld [vmem:[%s1074_s30 + $0xf] ss:$0 sm:$0xff]  ;;  %v855_v41 = vld [vmem:[%s1074_s30 + $0xd] ss:$0 sm:$0xff]  ;;  %vm948_vm8 = vmmov 1  }
  0x41   : > { %v1085_v24 = vsub.f32 %v335_v17, %v343_v14  ;;  %v337_v28 = vadd.f32 %v333_v23, %v329_v22  ;;  %v853_v44 = vld [vmem:[%s1074_s30 + $0xc] ss:$0 sm:$0xff]  ;;  %v857_v50 = vld [vmem:[%s1074_s30 + $0xb] ss:$0 sm:$0xff]  ;;  %v858_v52 = vld [vmem:[%s1074_s30 + $0x8] ss:$0 sm:$0xff] }
  0x42   : > { %v1093_v30 = vsub.f32 %v336_v25, %v344_v26  ;;  %350 = vst [vmem:[#allocation2 + $0x10] sm:$0xff] %v1088_v27  ;;  %vm354_vm6 = vcmp.gt.f32.partialorder %v1088_v27, 1.0  ;;  %v502_v54 = vld [vmem:[%s1200_s2 + $0x8] sm:$0xff]  ;;  %v859_v59 = vld [vmem:[%s1074_s30 + $0x7] ss:$0 sm:$0xff]  ;;  %v949_v61 = vmov 1.0  }
  0x43   : > { %vm355_vm4 = vcmp.gt.f32.partialorder %v1085_v24, 1.0  ;;  %351 = vst [vmem:[#allocation2] sm:$0xff] %v1085_v24  ;;  %v1099_v32 = vsub.f32 %v337_v28, %v345_v29  ;;  %v696_v34 = vsel %vm354_vm6, 1.0, %v938_v13  ;;  %v861_v3 = vld [vmem:[%s1074_s30 + $0x4] ss:$0 sm:$0xff]  ;;  %vm725_vm12 = vmpackc.low %vm354_vm6, %vm948_vm8  ;;  %v736_v22 = vld [vmem:[%s1199_s1 + $0x8] sm:$0xff] }
  0x44   : > { %v697_v31 = vsel %vm355_vm4, 1.0, %v938_v13  ;;  %352 = vst [vmem:[#allocation2 + $0x18] sm:$0xff] %v1093_v30  ;;  %vm356_vm5 = vcmp.gt.f32.partialorder %v1093_v30, 1.0  ;;  %vm722_vm11 = vmpackc.low %vm948_vm8, %vm355_vm4  ;;  %v860_v6 = vld [vmem:[%s1074_s30 + $0x2] ss:$0 sm:$0xff]  ;;  %v738_v24 = vld [vmem:[%s1199_s1 + $0x18] sm:$0xff] }
  0x45   : > { %406 = vrot.lane.b32.xlu1 %v697_v31, %s939_s15  ;;  %416 = vrot.lane.b32.xlu0 %v697_v31, %s940_s17  ;;  %v698_v33 = vsel %vm356_vm5, 1.0, %v938_v13  ;;  %353 = vst [vmem:[#allocation2 + $0x8] sm:$0xff] %v1099_v32  ;;  %vm357_vm7 = vcmp.gt.f32.partialorder %v1099_v32, 1.0  ;;  %vm719_vm10 = vmpackc.low %vm356_vm5, %vm948_vm8  ;;  %v862_v7 = vld [vmem:[%s1074_s30 + $0x3] ss:$0 sm:$0xff] }
  0x46   : > { %401 = vrot.lane.b32.xlu2 %v698_v33, %s941_s6  ;;  %v699_v35 = vsel %vm357_vm7, 1.0, %v938_v13  ;;  %vm716_vm9 = vmpackc.low %vm948_vm8, %vm357_vm7  ;;  %v863_v10 = vld [vmem:[%s1074_s30 + $0x1] ss:$0 sm:$0xff]  ;;  %v864_v11 = vld [vmem:[%s1074_s30] ss:$0 sm:$0xff] }
  0x47   : > { %v735_v21 = vld [vmem:[%s1199_s1] sm:$0xff]  ;;  %v737_v23 = vld [vmem:[%s1199_s1 + $0x10] sm:$0xff] }
  0x48   : > { %v515_v30 = vld [vmem:[#allocation3] sm:$0xff] }
  0x49   : > { %vm521_vm13 = vcmp.gt.f32.partialorder %v515_v30, 1.0 }
  0x4d   : > { %411 = vrot.lane.b32.xlu1 %v696_v34, %s940_s17  ;;  %421 = vrot.lane.b32.xlu0 %v696_v34, %s942_s10 }
  0x4e   : > { %396 = vrot.lane.b32.xlu2 %v699_v35, %s943_s11 }
  0x55   : > { %391 = vrot.lane.b32.xlu0 %v696_v34, %s941_s6  ;;  %386 = vrot.lane.b32.xlu1 %v697_v31, %s943_s11  ;;  %v517_v34 = vmul.f32 0.95, %v515_v30 }
  0x56   : > { %376 = vrot.lane.b32.xlu2 %v699_v35, %s944_s12 }
  0x5d   : > { %381 = vrot.lane.b32.xlu0 %v698_v33, %s945_s28  ;;  %366 = vrot.lane.b32.xlu1 %v699_v35, %s946_s13  ;;  %s731_s13 = sshll.u32 (%p1043_p9), %s919_s19, 2 }
  0x5e   : > { %371 = vrot.lane.b32.xlu2 %v698_v33, %s944_s12  ;;  %s547_s14 = sadd.s32 (%p1043_p9), %s923_s20, %s731_s13 }
  0x5f   : > { %s732_s26 = sshll.u32 (%p1043_p9), %s547_s14, 2 }
  0x60   : > { %s549_s30 = scalar_lea.vmem (%p1043_p9), %s1202_s4, %s732_s26 }
  0x65   : > { %505 = vperm.xlu0 %851, %v501_v53   ;;  %510 = vperm.xlu1 %852, %v502_v54  }
  0xa0   : > { %v402_v36 = vpop.permute.xlu2 %401 }
  0xa1   : > { %v405_v56 = vmul.f32 %v857_v50, %v402_v36 }
  0xa3   : > { %v717_v62 = vpack.c.bf16 %v405_v56, %v949_v61 }
  0xa8   : > { %v397_v47 = vpop.permute.xlu2 %396 }
  0xa9   : > { %v400_v58 = vmul.f32 %v858_v52, %v397_v47 }
  0xab   : > { %v720_v1 = vpack.c.bf16 1.0, %v400_v58 }
  0xb0   : > { %v377_v63 = vpop.permute.xlu2 %376 }
  0xb1   : > { %v380_v15 = vmul.f32 %v860_v6, %v377_v63 }
  0xb7   : > { %v407_v37 = vpop.permute.xlu1 %406  ;;  %v417_v38 = vpop.permute.xlu0 %416 }
  0xb8   : > { %v420_v45 = vmul.f32 %v854_v39, %v417_v38  ;;  %v410_v51 = vmul.f32 %v853_v44, %v407_v37  ;;  %v372_v12 = vpop.permute.xlu2 %371  ;;  %v523_v38 = vsel %vm521_vm13, 1.0, %v938_v13 }
  0xb9   : > { %v375_v17 = vmul.f32 %v863_v10, %v372_v12 }
  0xbf   : > { %v412_v42 = vpop.permute.xlu1 %411  ;;  %v422_v43 = vpop.permute.xlu0 %421 }
  0xc0   : > { %v425_v46 = vmul.f32 %v856_v40, %v422_v43  ;;  %v415_v48 = vmul.f32 %v855_v41, %v412_v42  ;;  %v516_v42 = vld [vmem:[#allocation3 + $0x8] sm:$0xff] }
  0xc1   : > { %v518_v47 = vmul.f32 0.95, %v516_v42  ;;  %vm522_vm14 = vcmp.gt.f32.partialorder %v516_v42, 1.0 }
  0xc2   : > { %v433_v49 = vpack.c.bf16 %v425_v46, %v420_v45  ;;  %v432_v55 = vpack.c.bf16 %v415_v48, %v410_v51  ;;  %v524_v50 = vsel %vm522_vm14, 1.0, %v938_v13 }
  0xc4   : > { %466 = vmatpush.bf16.msra.mxu0 %v433_v49  ;;  %742 = vmatpush.bf16.msra.mxu1 %v433_v49 }
  0xc5   : > { %743 = vmatpush.bf16.msra.mxu2 %v433_v49  ;;  %744 = vmatpush.bf16.msra.mxu3 %v433_v49 }
  0xc7   : > { %v392_v60 = vpop.permute.xlu0 %391  ;;  %v387_v0 = vpop.permute.xlu1 %386 }
  0xc8   : > { %467 = vmatpush.bf16.msra.mxu0 %v432_v55  ;;  %745 = vmatpush.bf16.msra.mxu1 %v432_v55  ;;  %v395_v2 = vmul.f32 %v859_v59, %v392_v60  ;;  %v390_v5 = vmul.f32 %v861_v3, %v387_v0 }
  0xc9   : > { %746 = vmatpush.bf16.msra.mxu2 %v432_v55  ;;  %747 = vmatpush.bf16.msra.mxu3 %v432_v55 }
  0xca   : > { %v723_v4 = vpack.c.bf16 %v395_v2, %v949_v61  ;;  %v726_v9 = vpack.c.bf16 1.0, %v390_v5 }
  0xcc   : > { %718 = vmatpush.bf16.msk.msra.mxu0 %vm716_vm9, %v717_v62  ;;  %748 = vmatpush.bf16.msk.msra.mxu1 %vm716_vm9, %v717_v62 }
  0xcd   : > { %749 = vmatpush.bf16.msk.msra.mxu2 %vm716_vm9, %v717_v62  ;;  %750 = vmatpush.bf16.msk.msra.mxu3 %vm716_vm9, %v717_v62 }
  0xcf   : > { %v382_v8 = vpop.permute.xlu0 %381  ;;  %v367_v14 = vpop.permute.xlu1 %366 }
  0xd0   : > { %721 = vmatpush.bf16.msk.msra.mxu0 %vm719_vm10, %v720_v1  ;;  %751 = vmatpush.bf16.msk.msra.mxu1 %vm719_vm10, %v720_v1  ;;  %v385_v16 = vmul.f32 %v862_v7, %v382_v8  ;;  %v370_v18 = vmul.f32 %v864_v11, %v367_v14 }
  0xd1   : > { %752 = vmatpush.bf16.msk.msra.mxu2 %vm719_vm10, %v720_v1  ;;  %753 = vmatpush.bf16.msk.msra.mxu3 %vm719_vm10, %v720_v1 }
  0xd2   : > { %v427_v19 = vpack.c.bf16 %v385_v16, %v380_v15  ;;  %v426_v20 = vpack.c.bf16 %v375_v17, %v370_v18 }
  0xd4   : > { %724 = vmatpush.bf16.msk.msra.mxu0 %vm722_vm11, %v723_v4  ;;  %754 = vmatpush.bf16.msk.msra.mxu1 %vm722_vm11, %v723_v4 }
  0xd5   : > { %755 = vmatpush.bf16.msk.msra.mxu2 %vm722_vm11, %v723_v4  ;;  %756 = vmatpush.bf16.msk.msra.mxu3 %vm722_vm11, %v723_v4 }
  0xd7   : > { %v506_v32 = vpop.permute.xlu0 %505  ;;  %v511_v46 = vpop.permute.xlu1 %510 }
  0xd8   : > { %727 = vmatpush.bf16.msk.msra.mxu0 %vm725_vm12, %v726_v9  ;;  %757 = vmatpush.bf16.msk.msra.mxu1 %vm725_vm12, %v726_v9 }
  0xd9   : > { %758 = vmatpush.bf16.msk.msra.mxu2 %vm725_vm12, %v726_v9  ;;  %759 = vmatpush.bf16.msk.msra.mxu3 %vm725_vm12, %v726_v9 }
  0xdc   : > { %472 = vmatpush.bf16.msra.mxu0 %v427_v19  ;;  %760 = vmatpush.bf16.msra.mxu1 %v427_v19 }
  0xdd   : > { %761 = vmatpush.bf16.msra.mxu2 %v427_v19  ;;  %762 = vmatpush.bf16.msra.mxu3 %v427_v19 }
  0xe0   : > { %473 = vmatpush.bf16.msra.mxu0 %v426_v20  ;;  %763 = vmatpush.bf16.msra.mxu1 %v426_v20 }
  0xe1   : > { %764 = vmatpush.bf16.msra.mxu2 %v426_v20  ;;  %765 = vmatpush.bf16.msra.mxu3 %v426_v20 }
  0xe3   : > { %474 = vmatmul.bf16.vlgmr.msra.gmra.mxu0 %v735_v21  ;;  %479 = vmatmul.bf16.vlgmr.msra.gmra.mxu1 %v736_v22 }
  0xe4   : > { %484 = vmatmul.bf16.vlgmr.msra.gmra.mxu2 %v737_v23  ;;  %489 = vmatmul.bf16.vlgmr.msra.gmra.mxu3 %v738_v24 }
 0x160   : > { %v475_v25 = vpop.f32.mrf.mxu0  ;;  %v480_v26 = vpop.f32.mrf.mxu1 }
 0x161   : > { %v495_v27 = vmax.f32 %v475_v25, %v480_v26 }
 0x167   : > { %v485_v28 = vpop.f32.mrf.mxu2  ;;  %v490_v29 = vpop.f32.mrf.mxu3 }
 0x168   : > { %v497_v31 = vmax.f32 %v485_v28, %v490_v29  ;;  %v477_v36 = vpop.f32.mrf.mxu0  ;;  %v482_v37 = vpop.f32.mrf.mxu1 }
 0x169   : > { %v496_v43 = vmax.f32 %v477_v36, %v482_v37 }
 0x16a   : > { %v499_v33 = vmax.f32 %v495_v27, %v497_v31 }
 0x16c   : > { %v513_v35 = vadd.f32 %v506_v32, %v499_v33 }
 0x16e   : > { %v519_v39 = vadd.f32 %v517_v34, %v513_v35 }
 0x16f   : > { %v487_v40 = vpop.f32.mrf.mxu2  ;;  %v492_v41 = vpop.f32.mrf.mxu3 }
 0x170   : > { %v525_v44 = vsub.f32 %v519_v39, %v523_v38  ;;  %v498_v45 = vmax.f32 %v487_v40, %v492_v41 }
 0x172   : > { %527 = vst [vmem:[#allocation3] sm:$0xff] %v525_v44  ;;  %v500_v48 = vmax.f32 %v496_v43, %v498_v45  ;;  %vm529_vm15 = vcmp.gt.f32.partialorder %v525_v44, 1.0 }
 0x173   : > { %v728_v53 = vsel %vm529_vm15, 1.0, %v938_v13 }
 0x174   : > { %v514_v49 = vadd.f32 %v511_v46, %v500_v48 }
 0x176   : > { %v520_v51 = vadd.f32 %v518_v47, %v514_v49 }
 0x178   : > { %v526_v52 = vsub.f32 %v520_v51, %v524_v50 }
 0x17a   : > { %528 = vst [vmem:[#allocation3 + $0x8] sm:$0xff] %v526_v52  ;;  %vm530_vm0 = vcmp.gt.f32.partialorder %v526_v52, 1.0  ;;  %545 = sbr.rel (!%p1043_p9) target bundleno = 392 (0x188), region = 120 }
 0x17b   : > { %v729_v54 = vsel %vm530_vm0, 1.0, %v938_v13 }
 0x17c   : > { %v740_v55 = vpack.c.bf16 %v729_v54, %v728_v53 }
 0x17e   : > { %741 = vst [vmem:[%s1076_s5] sm:$0xff] %v740_v55  }
 0x185   : > { %v566_v56 = vld [vmem:[%s1076_s5] sm:$0xf]  ;;  %v568_v57 = vld [vmem:[%s1076_s5 + $0x4] sm:$0xf] }
 0x186   : > { %567 = vst [vmem:[%s549_s30] sm:$0xf] %v566_v56 }
 0x187   : > { %569 = vst [vmem:[%s549_s30 + $0x8] sm:$0xf] %v568_v57 }
 0x188 PF: > { %s14_s23 = sadd.s32 1, %s935_s23   ;;  %s1205_s15 = smov %s907_s16 }
 0x189   : > { %p11_p1 = scmp.ge.s32.totalorder %s14_s23, 32   ;;  %s1206_s16 = smov %s1051_s9 }
 0x18a   : > { %s1207_s17 = smov %s915_s18  ;;  %s1208_s18 = smov %s1048_s8 }
 0x18b   : > { %s1209_s19 = smov %s927_s21  ;;  %s1210_s20 = smov %s931_s22 }
 0x18c   : > { %s1211_s21 = smov %s1214_s24  ;;  %s1212_s22 = smov %s1218_s25 }
 0x18d   :  { %13 = sbr.rel (!%p11_p1) target bundleno = 5 (0x5), region = 200 }

// kernel: vgg_nn_forward.5
= control target key start
LH: loop header
LB: loop body
LE: loop exit
PB: predicated region body
PF: predicated region fallthrough
CT: control target
= control target key end

     0   :  { %s534_s15 = smov 0   ;;  %s575_s0 = inlined_call_operand.vmem [shape: bf16[15,4,1024], index: 0, kind: input, shape index: {}]   ;;  %s576_s1 = inlined_call_operand.vmem [shape: bf16[5,1024], index: 1, kind: input, shape index: {}]   ;;  %s577_s2 = inlined_call_operand.vmem [shape: f32[1,5], index: 2, kind: input, shape index: {}]   ;;  %s578_s3 = inlined_call_operand.vmem [shape: f32[15,4,5], index: 3, kind: output, shape index: {0}]   ;;  %s579_s4 = inlined_call_operand.vmem [shape: f32[15,4,5], index: 4, kind: output, shape index: {1}]  }
   0x1 LB: > { %s474_s16 = sadd.s32 4294967295, %s505_s15   ;;  %p478_p0 = scmp.ge.s32.totalorder %s505_s15, 1  ;;  %s505_s15 = sphi %s534_s15, %s15_s15  }
   0x2   : > { %p165_p1 = scmp.lt.s32.totalorder %s505_s15, 16 }
   0x4   : > { %p166_p2 = pnand %p478_p0, %p165_p1 }
   0x5   : > { %p194_p3 = scmp.lt.s32.totalorder (!%p166_p2), %s474_s16, 14  ;;  %p483_p4 = scmp.ne.s32.totalorder (!%p166_p2), %s474_s16, 0 }
   0x6   : > { %169 = sbr.rel (%p166_p2) target bundleno = 193 (0xc1), region = 32 }
   0xb   : > { %s195_s17 = scalar_select %p194_p3, %s474_s16, 14 }
   0xc   : > { %211 = sbr.rel (%p483_p4) target bundleno = 19 (0x13), region = 36 }
   0xd   : > { %s487_s18 = sshll.u32 %s195_s17, 4  ;;  %s481_s19 = sshll.u32 %s195_s17, 2 }
   0xe   : > { %s198_s22 = scalar_lea.vmem %s575_s0, %s487_s18  ;;  %s548_s25 = scalar_lea.vmem %s578_s3, %s481_s19 }
   0xf   : > { %s553_s28 = scalar_lea.vmem %s579_s4, %s481_s19 }
  0x11   : > { %vm212_vm0 = vcmask 35840   ;;  %v507_v0 = vmov 0.0  }
  0x12   : > { %213 = vst.msk [vmem:[#allocation2] sm:$0xf] %vm212_vm0, %v507_v0 }
  0x13 PF: > { %v216_v1 = vld [vmem:[%s576_s1] sm:$0x77]  ;;  %v217_v2 = vld [vmem:[%s576_s1 + $0x8] sm:$0x77]  ;;  %v219_v8 = vld [vmem:[%s576_s1 + $0x18] sm:$0x77] }
  0x14   : > { %v214_v3 = vld [vmem:[%s198_s22] sm:$0xff]  ;;  %v249_v4 = vunpack.c.l.b16 %v216_v1  ;;  %v250_v5 = vunpack.c.h.b16 %v216_v1  ;;  %v251_v6 = vunpack.c.l.b16 %v217_v2  ;;  %v252_v7 = vunpack.c.h.b16 %v217_v2  ;;  %v218_v9 = vld [vmem:[%s576_s1 + $0x10] sm:$0x77]  ;;  %v215_v14 = vld [vmem:[%s198_s22 + $0x8] sm:$0xff] }
  0x15   : > { %225 = vst [vmem:[#allocation1] ss:$4 sm:$0xff] %v214_v3  ;;  %v255_v10 = vunpack.c.l.b16 %v219_v8  ;;  %v253_v11 = vunpack.c.l.b16 %v218_v9  ;;  %v256_v12 = vunpack.c.h.b16 %v219_v8  ;;  %v254_v13 = vunpack.c.h.b16 %v218_v9  ;;  %v498_v31 = vld [vmem:[%s577_s2] ss:$0 sm:$0xff] }
  0x16   : > { %v257_v15 = vpack.c.b16 %v249_v4, %v249_v4  ;;  %v258_v16 = vpack.c.b16 %v250_v5, %v250_v5  ;;  %v259_v17 = vpack.c.b16 %v251_v6, %v251_v6  ;;  %v260_v18 = vpack.c.b16 %v252_v7, %v252_v7  ;;  %228 = vst [vmem:[#allocation1 + $0x20] ss:$4 sm:$0xff] %v215_v14 }
  0x17   : > { %v263_v19 = vpack.c.b16 %v255_v10, %v255_v10  ;;  %v261_v20 = vpack.c.b16 %v253_v11, %v253_v11  ;;  %v264_v21 = vpack.c.b16 %v256_v12, %v256_v12  ;;  %v262_v22 = vpack.c.b16 %v254_v13, %v254_v13 }
  0x18   : > { %280 = vmatpush.bf16.xpose.msra.mxu0 %v257_v15  ;;  %293 = vmatpush.bf16.xpose.msra.mxu1 %v258_v16  ;;  %v508_v56 = vmov 0.0   ;;  %vm383_vm2 = vcmask 35840  }
  0x19   : > { %306 = vmatpush.bf16.xpose.msra.mxu2 %v259_v17  ;;  %319 = vmatpush.bf16.xpose.msra.mxu3 %v260_v18  ;;  %v377_v47 = vld [vmem:[#allocation2] sm:$0xf] }
  0x1a   : > { %v378_v52 = vmul.f32 0.95, %v377_v47  ;;  %vm380_vm1 = vcmp.gt.f32.partialorder %v377_v47, 1.0 }
  0x1b   : > { %v381_v57 = vsel %vm380_vm1, 1.0, %v508_v56 }
  0x1c   : > { %v229_v23 = vld.sshfl [vmem:[#allocation1] sm:$0xff pattern:$0x73625140]  ;;  %v230_v24 = vld.sshfl [vmem:[#allocation1 + $0x8] sm:$0xff pattern:$0x73625140] }
  0x1d   : > { %v231_v25 = vld.sshfl [vmem:[#allocation1 + $0x10] sm:$0xff pattern:$0x73625140]  ;;  %v232_v26 = vld.sshfl [vmem:[#allocation1 + $0x18] sm:$0xff pattern:$0x73625140] }
  0x1e   : > { %v233_v27 = vld.sshfl [vmem:[#allocation1 + $0x20] sm:$0xff pattern:$0x73625140]  ;;  %v234_v28 = vld.sshfl [vmem:[#allocation1 + $0x28] sm:$0xff pattern:$0x73625140] }
  0x1f   : > { %281 = vmatmul.bf16.vlgmr.msra.gmra.mxu0 %v229_v23  ;;  %294 = vmatmul.bf16.vlgmr.msra.gmra.mxu1 %v230_v24  ;;  %v235_v29 = vld.sshfl [vmem:[#allocation1 + $0x30] sm:$0xff pattern:$0x73625140]  ;;  %v236_v30 = vld.sshfl [vmem:[#allocation1 + $0x38] sm:$0xff pattern:$0x73625140] }
  0x20   : > { %332 = vmatpush.bf16.xpose.msrb.mxu0 %v261_v20  ;;  %345 = vmatpush.bf16.xpose.msrb.mxu1 %v262_v22 }
  0x21   : > { %358 = vmatpush.bf16.xpose.msrb.mxu2 %v263_v19  ;;  %371 = vmatpush.bf16.xpose.msrb.mxu3 %v264_v21 }
  0x22   : > { %307 = vmatmul.bf16.vlgmr.msra.gmra.mxu2 %v231_v25  ;;  %320 = vmatmul.bf16.vlgmr.msra.gmra.mxu3 %v232_v26 }
  0x2f   : > { %333 = vmatmul.bf16.vlgmr.msrb.gmra.mxu0 %v233_v27  ;;  %346 = vmatmul.bf16.vlgmr.msrb.gmra.mxu1 %v234_v28 }
  0x32   : > { %359 = vmatmul.bf16.vlgmr.msrb.gmra.mxu2 %v235_v29  ;;  %372 = vmatmul.bf16.vlgmr.msrb.gmra.mxu3 %v236_v30 }
  0x9c   : > { %v282_v32 = vpop.f32.mrf.mxu0  ;;  %v295_v33 = vpop.f32.mrf.mxu1 }
  0x9d   : > { %v283_v34 = vadd.f32 %v498_v31, %v282_v32 }
  0x9f   : > { %v296_v37 = vadd.f32 %v295_v33, %v283_v34 }
  0xa4   : > { %v284_v38 = vpop.f32.mrf.mxu0  ;;  %v297_v39 = vpop.f32.mrf.mxu1 }
  0xa5   : > { %v308_v35 = vpop.f32.mrf.mxu2  ;;  %v321_v36 = vpop.f32.mrf.mxu3 }
  0xa6   : > { %v309_v40 = vadd.f32 %v308_v35, %v296_v37 }
  0xa8   : > { %v322_v43 = vadd.f32 %v321_v36, %v309_v40 }
  0xac   : > { %v334_v44 = vpop.f32.mrf.mxu0  ;;  %v347_v45 = vpop.f32.mrf.mxu1 }
  0xad   : > { %v310_v41 = vpop.f32.mrf.mxu2  ;;  %v323_v42 = vpop.f32.mrf.mxu3  ;;  %v335_v46 = vadd.f32 %v334_v44, %v322_v43 }
  0xaf   : > { %v348_v48 = vadd.f32 %v347_v45, %v335_v46 }
  0xb4   : > { %v336_v53 = vpop.f32.mrf.mxu0  ;;  %v349_v54 = vpop.f32.mrf.mxu1 }
  0xb5   : > { %v360_v49 = vpop.f32.mrf.mxu2  ;;  %v373_v50 = vpop.f32.mrf.mxu3 }
  0xb6   : > { %v361_v51 = vadd.f32 %v360_v49, %v348_v48 }
  0xb8   : > { %v374_v55 = vadd.f32 %v373_v50, %v361_v51 }
  0xba   : > { %v379_v58 = vadd.f32 %v378_v52, %v374_v55 }
  0xbc   : > { %v382_v59 = vsub.f32 %v379_v58, %v381_v57 }
  0xbd   : > { %v362_v60 = vpop.f32.mrf.mxu2  ;;  %v375_v61 = vpop.f32.mrf.mxu3 }
  0xbe   : > { %384 = vst.msk [vmem:[#allocation2] sm:$0xf] %vm383_vm2, %v382_v59  ;;  %vm385_vm3 = vcmp.gt.f32.partialorder %v382_v59, 1.0 }
  0xbf   : > { %v484_v62 = vsel %vm385_vm3, 1.0, %v508_v56  ;;  %389 = vst.msk [vmem:[%s553_s28] sm:$0xf] %vm383_vm2, %v382_v59 }
  0xc0   : > { %388 = vst.msk [vmem:[%s548_s25] sm:$0xf] %vm383_vm2, %v484_v62 }
  0xc1 PF: > { %s15_s15 = sadd.s32 1, %s505_s15  }
  0xc2   : > { %p12_p5 = scmp.ge.s32.totalorder %s15_s15, 17  }
  0xc4   :  { %14 = sbr.rel (!%p12_p5) target bundleno = 1 (0x1), region = 79 }

</bundles_post_ra>
